<compile_context>
chip_gen: v5e
topology: v5e:2x2
jax: 0.10.0
libtpu: 0.0.40
codegen_flags: <defaults>
</compile_context>

<pallas_src>
import functools

import jax
import jax.numpy as jnp
from jax.experimental import pallas as pl
from jax.experimental.pallas import tpu as pltpu


def _round_up(x, m):
    return (x + m - 1) // m * m


TB = 8  # images per grid step (multiple of 8 -> full (8,128) output tiles)


# ----------------------------------------------------------------------------
# Fused kernel: conv (single K-dim matmul over im2col patches) + bias + ReLU +
# global average pool + 2-layer MLP head + L2 normalize.
# One grid step == TB images (batch-parallel grid).
# ----------------------------------------------------------------------------
def fused_forward_kernel(x_ref, cw_ref, cb_ref, w1_ref, b1_ref, w2_ref, b2_ref,
                         pooled_ref, z_ref):
    tb, hw, kpad = x_ref.shape
    cpad = cw_ref.shape[1]

    # Conv stem as ONE lane-dense MXU matmul with f32 accumulation.
    patches = x_ref[...].reshape(tb * hw, kpad)                        # bf16
    acc = jnp.dot(patches, cw_ref[...],
                  preferred_element_type=jnp.float32)                  # f32

    act = jnp.maximum(acc + cb_ref[...], 0.0)                          # f32 VPU
    pooled = jnp.mean(act.reshape(tb, hw, cpad), axis=1)               # (TB, Cpad)
    pooled_ref[...] = pooled

    # 2-layer projection head + L2 normalize (M = TB rows on the MXU).
    h = jnp.dot(pooled.astype(jnp.bfloat16), w1_ref[...],
                preferred_element_type=jnp.float32) + b1_ref[...]
    h = jnp.maximum(h, 0.0)
    z = jnp.dot(h.astype(jnp.bfloat16), w2_ref[...],
                preferred_element_type=jnp.float32) + b2_ref[...]
    inv = jax.lax.rsqrt(jnp.sum(z * z, axis=-1, keepdims=True) + 1e-12)
    z_ref[...] = z * inv


def fused_forward(patches, conv_w, conv_b, w1, b1, w2, b2):
    """patches: (Npad, H*W, Kpad) bf16 im2col'ed input, Npad % TB == 0."""
    npad, hw, kpad = patches.shape
    cpad = conv_w.shape[1]
    ppad = w2.shape[1]
    steps = npad // TB

    # Explicit per-step VMEM budget (double-buffered input block, weights,
    # f32 activation slab) with ~2x headroom, clamped so it stays safe on the
    # 64 MiB-physical v7x while exploiting headroom on v5e/v6e.
    block_bytes = TB * hw * kpad * 2
    weight_bytes = (kpad * cpad + cpad * cpad + cpad * ppad) * 2
    act_bytes = TB * hw * cpad * 4
    vmem_limit = int(max(16 << 20,
                         min(2 * (2 * block_bytes + 2 * weight_bytes + act_bytes),
                             48 << 20)))

    pooled, z = pl.pallas_call(
        fused_forward_kernel,
        out_shape=(
            jax.ShapeDtypeStruct((npad, cpad), jnp.float32),
            jax.ShapeDtypeStruct((npad, ppad), jnp.float32),
        ),
        grid_spec=pl.GridSpec(
            grid=(steps,),
            in_specs=[
                pl.BlockSpec((TB, hw, kpad), lambda n: (n, 0, 0)),
                pl.BlockSpec((kpad, cpad), lambda n: (0, 0)),
                pl.BlockSpec((1, cpad), lambda n: (0, 0)),
                pl.BlockSpec((cpad, cpad), lambda n: (0, 0)),
                pl.BlockSpec((1, cpad), lambda n: (0, 0)),
                pl.BlockSpec((cpad, ppad), lambda n: (0, 0)),
                pl.BlockSpec((1, ppad), lambda n: (0, 0)),
            ],
            out_specs=(
                pl.BlockSpec((TB, cpad), lambda n: (n, 0)),
                pl.BlockSpec((TB, ppad), lambda n: (n, 0)),
            ),
        ),
        compiler_params=pltpu.CompilerParams(
            dimension_semantics=("parallel",),
            vmem_limit_bytes=vmem_limit),
    )(patches, conv_w, conv_b, w1, b1, w2, b2)
    return pooled, z


# ----------------------------------------------------------------------------
# CLModel forward (JAX wrapper)
# ----------------------------------------------------------------------------
@functools.partial(jax.jit, static_argnums=(2,))
def cl_model_forward(x_nchw, padded_params, feat_dim):
    n, c, h, w = x_nchw.shape
    kpad = padded_params["conv_w"].shape[0]

    # PyTorch conv inputs are NCHW; transpose to NHWC, cast MXU operand to
    # bf16, spatially pad once (3x3, stride 1, pad 1), and im2col so the conv
    # becomes a single K-dim matmul inside the kernel.  Tap-major last axis
    # matches conv_w.reshape(9*Cin, Cout).
    x = jnp.transpose(x_nchw, (0, 2, 3, 1)).astype(jnp.bfloat16)
    xp = jnp.pad(x, ((0, 0), (1, 1), (1, 1), (0, 0)))
    patches = jnp.concatenate(
        [xp[:, kh:kh + h, kw:kw + w, :] for kh in range(3) for kw in range(3)],
        axis=-1).reshape(n, h * w, 9 * c)
    npad = _round_up(max(n, TB), TB)
    patches = jnp.pad(patches, ((0, npad - n), (0, 0), (0, kpad - 9 * c)))

    pooled, z = fused_forward(
        patches, padded_params["conv_w"], padded_params["conv_b"],
        padded_params["w1"], padded_params["b1"],
        padded_params["w2"], padded_params["b2"])
    # Drop batch padding and the zero channel padding (padded weight columns /
    # bias entries are zero -> padded z lanes are zero -> L2 norm unchanged).
    return pooled[:n, :feat_dim], z[:n, :feat_dim]


def init_params(key, c_in, feat_dim):
    k = jax.random.split(key, 3)
    scale_conv = 1.0 / jnp.sqrt(9.0 * c_in)
    scale_fc = 1.0 / jnp.sqrt(float(feat_dim))
    # conv_w layout: tap-major (kh*3+kw, cin, cout).  NOTE: real PyTorch conv
    # weights (cout, cin, kh, kw) must be permuted via
    # w.transpose(2, 3, 1, 0).reshape(9, cin, cout) to match this layout.
    return {
        "conv_w": (jax.random.normal(k[0], (9, c_in, feat_dim), jnp.float32)
                   * scale_conv),
        "conv_b": jnp.zeros((1, feat_dim), jnp.float32),
        "w1": jax.random.normal(k[1], (feat_dim, feat_dim), jnp.float32) * scale_fc,
        "b1": jnp.zeros((1, feat_dim), jnp.float32),
        "w2": jax.random.normal(k[2], (feat_dim, feat_dim), jnp.float32) * scale_fc,
        "b2": jnp.zeros((1, feat_dim), jnp.float32),
    }


def pad_params(params, c_in, feat_dim):
    """Reshape conv_w to (9*Cin, Cout), zero-pad K and channel dims to
    multiples of 128 (lane-dense MXU operands, unmasked stores) and cast
    matmul operands to bf16 (accumulation is f32 in-kernel).  Biases stay f32
    for the VPU path."""
    cpad = _round_up(feat_dim, 128)
    kpad = _round_up(9 * c_in, 128)
    pc = cpad - feat_dim
    cw = params["conv_w"].reshape(9 * c_in, feat_dim)
    return {
        "conv_w": jnp.pad(cw, ((0, kpad - 9 * c_in),
                               (0, pc))).astype(jnp.bfloat16),
        "conv_b": jnp.pad(params["conv_b"], ((0, 0), (0, pc))),
        "w1": jnp.pad(params["w1"], ((0, pc), (0, pc))).astype(jnp.bfloat16),
        "b1": jnp.pad(params["b1"], ((0, 0), (0, pc))),
        "w2": jnp.pad(params["w2"], ((0, pc), (0, pc))).astype(jnp.bfloat16),
        "b2": jnp.pad(params["b2"], ((0, 0), (0, pc))),
    }


def reference_forward(x_nchw, params):
    """Pure-JAX reference (per-tap conv), same bf16 operand rounding."""
    q = lambda a: a.astype(jnp.bfloat16).astype(jnp.float32)
    x = q(jnp.transpose(x_nchw, (0, 2, 3, 1)))
    n, h, w, _ = x.shape
    xp = jnp.pad(x, ((0, 0), (1, 1), (1, 1), (0, 0)))
    cw = q(params["conv_w"])
    acc = jnp.zeros((n, h, w, cw.shape[-1]), jnp.float32)
    for t in range(9):
        kh, kw = divmod(t, 3)
        acc = acc + jnp.einsum("nhwc,co->nhwo",
                               xp[:, kh:kh + h, kw:kw + w, :], cw[t])
    act = jnp.maximum(acc + params["conv_b"], 0.0)
    pooled = jnp.mean(act, axis=(1, 2))
    hdd = jnp.maximum(q(pooled) @ q(params["w1"]) + params["b1"], 0.0)
    z = q(hdd) @ q(params["w2"]) + params["b2"]
    z = z * jax.lax.rsqrt(jnp.sum(z * z, axis=-1, keepdims=True) + 1e-12)
    return pooled, z


if __name__ == "__main__":
    key = jax.random.PRNGKey(0)
    kx, kp = jax.random.split(key)

    N, C, H, W = 2, 4, 16, 16          # small NCHW input (PyTorch convention)
    feat_dim = 32                      # stand-in for model_dict_cifar feat_dim

    x = jax.random.normal(kx, (N, C, H, W), jnp.float32)
    params = init_params(kp, C, feat_dim)
    kparams = pad_params(params, C, feat_dim)

    pooled, z = cl_model_forward(x, kparams, feat_dim)
    jax.block_until_ready((pooled, z))

    assert pooled.shape == (N, feat_dim)
    assert z.shape == (N, feat_dim)
    # projections are L2-normalized
    norms = jnp.linalg.norm(z, axis=-1)
    assert bool(jnp.all(jnp.abs(norms - 1.0) < 1e-3))

    # numerical check against pure-JAX reference (same bf16 operand rounding;
    # f32 accumulation order differs slightly: single K matmul vs 9 taps)
    pooled_ref, z_ref = reference_forward(x, params)
    assert bool(jnp.max(jnp.abs(z - z_ref)) < 2e-2)
    scale = jnp.max(jnp.abs(pooled_ref)) + 1e-6
    assert bool(jnp.max(jnp.abs(pooled - pooled_ref)) / scale < 2e-2)

    print("KERNEL_OK")
</pallas_src>

<mosaic_0001>
module attributes {stable_mosaic.version = 11 : i64} {
  func.func @fused_forward_kernel(%arg0: i32, %arg1: memref<8x256x128xbf16, #tpu.memory_space<vmem>>, %arg2: memref<128x128xbf16, #tpu.memory_space<vmem>>, %arg3: memref<1x128xf32, #tpu.memory_space<vmem>>, %arg4: memref<128x128xbf16, #tpu.memory_space<vmem>>, %arg5: memref<1x128xf32, #tpu.memory_space<vmem>>, %arg6: memref<128x128xbf16, #tpu.memory_space<vmem>>, %arg7: memref<1x128xf32, #tpu.memory_space<vmem>>, %arg8: memref<8x128xf32, #tpu.memory_space<vmem>>, %arg9: memref<8x128xf32, #tpu.memory_space<vmem>>) attributes {dimension_semantics = [#tpu.dimension_semantics<parallel>], iteration_bounds = array<i64: 1>, scalar_prefetch = 0 : i64, scratch_operands = 0 : i64, tpu.core_type = #tpu.core_type<tc>, window_params = [{transform_indices = @transform_0, window_bounds = array<i64: 8, 256, 128>}, {pipeline_mode = #tpu.pipeline_mode<synchronous>, transform_indices = @transform_1, window_bounds = array<i64: 128, 128>}, {pipeline_mode = #tpu.pipeline_mode<synchronous>, transform_indices = @transform_2, window_bounds = array<i64: 1, 128>}, {pipeline_mode = #tpu.pipeline_mode<synchronous>, transform_indices = @transform_3, window_bounds = array<i64: 128, 128>}, {pipeline_mode = #tpu.pipeline_mode<synchronous>, transform_indices = @transform_4, window_bounds = array<i64: 1, 128>}, {pipeline_mode = #tpu.pipeline_mode<synchronous>, transform_indices = @transform_5, window_bounds = array<i64: 128, 128>}, {pipeline_mode = #tpu.pipeline_mode<synchronous>, transform_indices = @transform_6, window_bounds = array<i64: 1, 128>}, {transform_indices = @transform_7, window_bounds = array<i64: 8, 128>}, {transform_indices = @transform_8, window_bounds = array<i64: 8, 128>}]} {
    %c0 = arith.constant 0 : index
    %c0_0 = arith.constant 0 : index
    %c0_1 = arith.constant 0 : index
    %0 = vector.load %arg1[%c0, %c0_0, %c0_1] : memref<8x256x128xbf16, #tpu.memory_space<vmem>>, vector<8x256x128xbf16>
    %1 = vector.shape_cast %0 : vector<8x256x128xbf16> to vector<2048x128xbf16>
    %c0_2 = arith.constant 0 : index
    %c0_3 = arith.constant 0 : index
    %2 = vector.load %arg2[%c0_2, %c0_3] : memref<128x128xbf16, #tpu.memory_space<vmem>>, vector<128x128xbf16>
    %cst = arith.constant dense<0.000000e+00> : vector<2048x128xf32>
    %3 = tpu.matmul %1, %2, %cst {dimension_numbers = #tpu.dot_dimension_numbers<[1], [0], [0], [1], [0, 0, 1, 1], [], []>} : vector<2048x128xbf16>, vector<128x128xbf16>, vector<2048x128xf32> -> vector<2048x128xf32>
    %c0_4 = arith.constant 0 : index
    %c0_5 = arith.constant 0 : index
    %4 = vector.load %arg3[%c0_4, %c0_5] : memref<1x128xf32, #tpu.memory_space<vmem>>, vector<1x128xf32>
    %5 = vector.broadcast %4 : vector<1x128xf32> to vector<2048x128xf32>
    %6 = arith.addf %3, %5 : vector<2048x128xf32>
    %cst_6 = arith.constant 0.000000e+00 : f32
    %7 = vector.broadcast %cst_6 : f32 to vector<2048x128xf32>
    %8 = arith.maximumf %6, %7 : vector<2048x128xf32>
    %9 = vector.shape_cast %8 : vector<2048x128xf32> to vector<8x256x128xf32>
    %cst_7 = arith.constant dense<0.000000e+00> : vector<8x128xf32>
    %10 = vector.multi_reduction <add>, %9, %cst_7 [1] : vector<8x256x128xf32> to vector<8x128xf32>
    %cst_8 = arith.constant 2.560000e+02 : f32
    %11 = vector.broadcast %cst_8 : f32 to vector<8x128xf32>
    %12 = arith.divf %10, %11 : vector<8x128xf32>
    %c0_9 = arith.constant 0 : index
    %c0_10 = arith.constant 0 : index
    %13 = vector.load %arg8[%c0_9, %c0_10] : memref<8x128xf32, #tpu.memory_space<vmem>>, vector<8x128xf32>
    tpu.vector_store %arg8[%c0_9, %c0_10], %12 {strides = array<i32>} : memref<8x128xf32, #tpu.memory_space<vmem>>, vector<8x128xf32>,
    %14 = arith.truncf %12 : vector<8x128xf32> to vector<8x128xbf16>
    %c0_11 = arith.constant 0 : index
    %c0_12 = arith.constant 0 : index
    %15 = vector.load %arg4[%c0_11, %c0_12] : memref<128x128xbf16, #tpu.memory_space<vmem>>, vector<128x128xbf16>
    %cst_13 = arith.constant dense<0.000000e+00> : vector<8x128xf32>
    %16 = tpu.matmul %14, %15, %cst_13 {dimension_numbers = #tpu.dot_dimension_numbers<[1], [0], [0], [1], [0, 0, 1, 1], [], []>} : vector<8x128xbf16>, vector<128x128xbf16>, vector<8x128xf32> -> vector<8x128xf32>
    %c0_14 = arith.constant 0 : index
    %c0_15 = arith.constant 0 : index
    %17 = vector.load %arg5[%c0_14, %c0_15] : memref<1x128xf32, #tpu.memory_space<vmem>>, vector<1x128xf32>
    %18 = vector.broadcast %17 : vector<1x128xf32> to vector<8x128xf32>
    %19 = arith.addf %16, %18 : vector<8x128xf32>
    %cst_16 = arith.constant 0.000000e+00 : f32
    %20 = vector.broadcast %cst_16 : f32 to vector<8x128xf32>
    %21 = arith.maximumf %19, %20 : vector<8x128xf32>
    %22 = arith.truncf %21 : vector<8x128xf32> to vector<8x128xbf16>
    %c0_17 = arith.constant 0 : index
    %c0_18 = arith.constant 0 : index
    %23 = vector.load %arg6[%c0_17, %c0_18] : memref<128x128xbf16, #tpu.memory_space<vmem>>, vector<128x128xbf16>
    %cst_19 = arith.constant dense<0.000000e+00> : vector<8x128xf32>
    %24 = tpu.matmul %22, %23, %cst_19 {dimension_numbers = #tpu.dot_dimension_numbers<[1], [0], [0], [1], [0, 0, 1, 1], [], []>} : vector<8x128xbf16>, vector<128x128xbf16>, vector<8x128xf32> -> vector<8x128xf32>
    %c0_20 = arith.constant 0 : index
    %c0_21 = arith.constant 0 : index
    %25 = vector.load %arg7[%c0_20, %c0_21] : memref<1x128xf32, #tpu.memory_space<vmem>>, vector<1x128xf32>
    %26 = vector.broadcast %25 : vector<1x128xf32> to vector<8x128xf32>
    %27 = arith.addf %24, %26 : vector<8x128xf32>
    %28 = arith.mulf %27, %27 : vector<8x128xf32>
    %cst_22 = arith.constant dense<0.000000e+00> : vector<8xf32>
    %29 = vector.multi_reduction <add>, %28, %cst_22 [1] : vector<8x128xf32> to vector<8xf32>
    %30 = vector.shape_cast %29 : vector<8xf32> to vector<8x1xf32>
    %cst_23 = arith.constant 9.99999996E-13 : f32
    %31 = vector.broadcast %cst_23 : f32 to vector<8x1xf32>
    %32 = arith.addf %30, %31 : vector<8x1xf32>
    %33 = math.rsqrt %32 : vector<8x1xf32>
    %34 = vector.broadcast %33 : vector<8x1xf32> to vector<8x128xf32>
    %35 = arith.mulf %27, %34 : vector<8x128xf32>
    %c0_24 = arith.constant 0 : index
    %c0_25 = arith.constant 0 : index
    %36 = vector.load %arg9[%c0_24, %c0_25] : memref<8x128xf32, #tpu.memory_space<vmem>>, vector<8x128xf32>
    tpu.vector_store %arg9[%c0_24, %c0_25], %35 {strides = array<i32>} : memref<8x128xf32, #tpu.memory_space<vmem>>, vector<8x128xf32>,
    return
  }
  func.func @transform_0(%arg0: i32) -> (i32, i32, i32) {
    %c0_i32 = arith.constant 0 : i32
    %c0_i32_0 = arith.constant 0 : i32
    %c0_i32_1 = arith.constant 0 : i32
    return %arg0, %c0_i32, %c0_i32_0 : i32, i32, i32
  }
  func.func @transform_1(%arg0: i32) -> (i32, i32) {
    %c0_i32 = arith.constant 0 : i32
    %c0_i32_0 = arith.constant 0 : i32
    %c0_i32_1 = arith.constant 0 : i32
    return %c0_i32, %c0_i32_0 : i32, i32
  }
  func.func @transform_2(%arg0: i32) -> (i32, i32) {
    %c0_i32 = arith.constant 0 : i32
    %c0_i32_0 = arith.constant 0 : i32
    %c0_i32_1 = arith.constant 0 : i32
    return %c0_i32, %c0_i32_0 : i32, i32
  }
  func.func @transform_3(%arg0: i32) -> (i32, i32) {
    %c0_i32 = arith.constant 0 : i32
    %c0_i32_0 = arith.constant 0 : i32
    %c0_i32_1 = arith.constant 0 : i32
    return %c0_i32, %c0_i32_0 : i32, i32
  }
  func.func @transform_4(%arg0: i32) -> (i32, i32) {
    %c0_i32 = arith.constant 0 : i32
    %c0_i32_0 = arith.constant 0 : i32
    %c0_i32_1 = arith.constant 0 : i32
    return %c0_i32, %c0_i32_0 : i32, i32
  }
  func.func @transform_5(%arg0: i32) -> (i32, i32) {
    %c0_i32 = arith.constant 0 : i32
    %c0_i32_0 = arith.constant 0 : i32
    %c0_i32_1 = arith.constant 0 : i32
    return %c0_i32, %c0_i32_0 : i32, i32
  }
  func.func @transform_6(%arg0: i32) -> (i32, i32) {
    %c0_i32 = arith.constant 0 : i32
    %c0_i32_0 = arith.constant 0 : i32
    %c0_i32_1 = arith.constant 0 : i32
    return %c0_i32, %c0_i32_0 : i32, i32
  }
  func.func @transform_7(%arg0: i32) -> (i32, i32) {
    %c0_i32 = arith.constant 0 : i32
    %c0_i32_0 = arith.constant 0 : i32
    return %arg0, %c0_i32 : i32, i32
  }
  func.func @transform_8(%arg0: i32) -> (i32, i32) {
    %c0_i32 = arith.constant 0 : i32
    %c0_i32_0 = arith.constant 0 : i32
    return %arg0, %c0_i32 : i32, i32
  }
}

</mosaic_0001>

<bundles_post_ra>
// kernel: cl_model_forward.1
= control target key start
LH: loop header
LB: loop body
LE: loop exit
PB: predicated region body
PF: predicated region fallthrough
CT: control target
= control target key end

     0   :  { %vm2344_vm1 = vcmask 1041409   ;;  %vm2346_vm2 = vcmask 1042434   ;;  %vm2348_vm3 = vcmask 1043459   ;;  %vm2350_vm4 = vcmask 1044484   ;;  %s4437_s1 = inlined_call_operand.vmem [shape: bf16[128,128], index: 1, kind: input, shape index: {}]   ;;  %s4438_s2 = inlined_call_operand.vmem [shape: f32[1,128], index: 2, kind: input, shape index: {}]   ;;  %s4439_s0 = inlined_call_operand.vmem [shape: bf16[8,256,128], index: 0, kind: input, shape index: {}]   ;;  %s4440_s3 = inlined_call_operand.vmem [shape: bf16[128,128], index: 3, kind: input, shape index: {}]   ;;  %s4441_s5 = inlined_call_operand.vmem [shape: bf16[128,128], index: 5, kind: input, shape index: {}]   ;;  %s4442_s4 = inlined_call_operand.vmem [shape: f32[1,128], index: 4, kind: input, shape index: {}]   ;;  %s4443_s7 = inlined_call_operand.vmem [shape: f32[8,128], index: 7, kind: output, shape index: {0}]   ;;  %s4444_s6 = inlined_call_operand.vmem [shape: f32[1,128], index: 6, kind: input, shape index: {}]   ;;  %s4445_s8 = inlined_call_operand.vmem [shape: f32[8,128], index: 8, kind: output, shape index: {1}]  }
   0x1   :  { %v3324_v0 = vld [vmem:[%s4437_s1 + $0x38] sm:$0xff]  ;;  %v3323_v1 = vld [vmem:[%s4437_s1 + $0x30] sm:$0xff]  ;;  %v3322_v2 = vld [vmem:[%s4437_s1 + $0x28] sm:$0xff]  ;;  %vm2352_vm5 = vcmask 1045509   ;;  %vm2354_vm6 = vcmask 1046534   ;;  %vm2356_vm7 = vcmask 1047559  }
   0x2   :  { %1120 = vmatpush.bf16.msra.mxu0 %v3324_v0  ;;  %3341 = vmatpush.bf16.msra.mxu1 %v3324_v0  ;;  %v3321_v3 = vld [vmem:[%s4437_s1 + $0x20] sm:$0xff]  ;;  %v3320_v4 = vld [vmem:[%s4437_s1 + $0x18] sm:$0xff]  ;;  %v3319_v5 = vld [vmem:[%s4437_s1 + $0x10] sm:$0xff] }
   0x3   :  { %3342 = vmatpush.bf16.msra.mxu2 %v3324_v0  ;;  %3343 = vmatpush.bf16.msra.mxu3 %v3324_v0  ;;  %v3318_v6 = vld [vmem:[%s4437_s1 + $0x8] sm:$0xff]  ;;  %v3317_v7 = vld [vmem:[%s4437_s1] sm:$0xff]  ;;  %v3284_v11 = vld [vmem:[%s4439_s0 + $0x2f8] sm:$0xff] }
   0x4   :  { %v3189_v8 = vld [vmem:[%s4439_s0] sm:$0xff]  ;;  %v3222_v9 = vld [vmem:[%s4439_s0 + $0x108] sm:$0xff]  ;;  %v3223_v13 = vld [vmem:[%s4439_s0 + $0x110] sm:$0xff] }
   0x5   :  { %v3254_v10 = vld [vmem:[%s4439_s0 + $0x208] sm:$0xff]  ;;  %v3255_v14 = vld [vmem:[%s4439_s0 + $0x210] sm:$0xff]  ;;  %v3285_v15 = vld [vmem:[%s4439_s0 + $0x300] sm:$0xff] }
   0x6   :  { %1121 = vmatpush.bf16.msra.mxu0 %v3323_v1  ;;  %3344 = vmatpush.bf16.msra.mxu1 %v3323_v1  ;;  %v3190_v12 = vld [vmem:[%s4439_s0 + $0x8] sm:$0xff]  ;;  %v3191_v16 = vld [vmem:[%s4439_s0 + $0x10] sm:$0xff]  ;;  %v3224_v17 = vld [vmem:[%s4439_s0 + $0x118] sm:$0xff] }
   0x7   :  { %3345 = vmatpush.bf16.msra.mxu2 %v3323_v1  ;;  %3346 = vmatpush.bf16.msra.mxu3 %v3323_v1  ;;  %v3256_v18 = vld [vmem:[%s4439_s0 + $0x218] sm:$0xff]  ;;  %v3286_v19 = vld [vmem:[%s4439_s0 + $0x308] sm:$0xff]  ;;  %v3225_v21 = vld [vmem:[%s4439_s0 + $0x120] sm:$0xff] }
   0x8   :  { %v3192_v20 = vld [vmem:[%s4439_s0 + $0x18] sm:$0xff]  ;;  %v3257_v22 = vld [vmem:[%s4439_s0 + $0x220] sm:$0xff]  ;;  %v3287_v23 = vld [vmem:[%s4439_s0 + $0x310] sm:$0xff] }
   0x9   :  { %v3193_v24 = vld [vmem:[%s4439_s0 + $0x20] sm:$0xff]  ;;  %v3226_v25 = vld [vmem:[%s4439_s0 + $0x128] sm:$0xff]  ;;  %v3288_v27 = vld [vmem:[%s4439_s0 + $0x318] sm:$0xff] }
   0xa   :  { %1122 = vmatpush.bf16.msra.mxu0 %v3322_v2  ;;  %3347 = vmatpush.bf16.msra.mxu1 %v3322_v2  ;;  %v3258_v26 = vld [vmem:[%s4439_s0 + $0x228] sm:$0xff]  ;;  %v3227_v29 = vld [vmem:[%s4439_s0 + $0x130] sm:$0xff]  ;;  %v3289_v31 = vld [vmem:[%s4439_s0 + $0x320] sm:$0xff] }
   0xb   :  { %3348 = vmatpush.bf16.msra.mxu2 %v3322_v2  ;;  %3349 = vmatpush.bf16.msra.mxu3 %v3322_v2  ;;  %v3194_v28 = vld [vmem:[%s4439_s0 + $0x28] sm:$0xff]  ;;  %v3259_v30 = vld [vmem:[%s4439_s0 + $0x230] sm:$0xff]  ;;  %v3228_v33 = vld [vmem:[%s4439_s0 + $0x138] sm:$0xff] }
   0xc   :  { %v3195_v32 = vld [vmem:[%s4439_s0 + $0x30] sm:$0xff]  ;;  %v3260_v34 = vld [vmem:[%s4439_s0 + $0x238] sm:$0xff]  ;;  %v3290_v35 = vld [vmem:[%s4439_s0 + $0x328] sm:$0xff] }
   0xd   :  { %v3196_v36 = vld [vmem:[%s4439_s0 + $0x38] sm:$0xff]  ;;  %v3229_v37 = vld [vmem:[%s4439_s0 + $0x140] sm:$0xff]  ;;  %v3291_v39 = vld [vmem:[%s4439_s0 + $0x330] sm:$0xff] }
   0xe   :  { %1123 = vmatpush.bf16.msra.mxu0 %v3321_v3  ;;  %3350 = vmatpush.bf16.msra.mxu1 %v3321_v3  ;;  %v3261_v38 = vld [vmem:[%s4439_s0 + $0x240] sm:$0xff]  ;;  %v3230_v41 = vld [vmem:[%s4439_s0 + $0x148] sm:$0xff]  ;;  %v3292_v45 = vld [vmem:[%s4439_s0 + $0x338] sm:$0xff] }
   0xf   :  { %3351 = vmatpush.bf16.msra.mxu2 %v3321_v3  ;;  %3352 = vmatpush.bf16.msra.mxu3 %v3321_v3  ;;  %v3197_v40 = vld [vmem:[%s4439_s0 + $0x40] sm:$0xff]  ;;  %v3262_v44 = vld [vmem:[%s4439_s0 + $0x248] sm:$0xff]  ;;  %v3231_v59 = vld [vmem:[%s4439_s0 + $0x150] sm:$0xff] }
  0x10   :  { %v3558_v46 = vld [vmem:[%s4438_s2] ss:$0 sm:$0xff]  ;;  %v3198_v58 = vld [vmem:[%s4439_s0 + $0x48] sm:$0xff]  ;;  %v3263_v62 = vld [vmem:[%s4439_s0 + $0x250] sm:$0xff] }
  0x11   :  { %v3293_v63 = vld [vmem:[%s4439_s0 + $0x340] sm:$0xff] }
  0x12   :  { %1124 = vmatpush.bf16.msra.mxu0 %v3320_v4  ;;  %3353 = vmatpush.bf16.msra.mxu1 %v3320_v4 }
  0x13   :  { %3354 = vmatpush.bf16.msra.mxu2 %v3320_v4  ;;  %3355 = vmatpush.bf16.msra.mxu3 %v3320_v4 }
  0x16   :  { %1125 = vmatpush.bf16.msra.mxu0 %v3319_v5  ;;  %3356 = vmatpush.bf16.msra.mxu1 %v3319_v5 }
  0x17   :  { %3357 = vmatpush.bf16.msra.mxu2 %v3319_v5  ;;  %3358 = vmatpush.bf16.msra.mxu3 %v3319_v5 }
  0x1a   :  { %1126 = vmatpush.bf16.msra.mxu0 %v3318_v6  ;;  %3359 = vmatpush.bf16.msra.mxu1 %v3318_v6 }
  0x1b   :  { %3360 = vmatpush.bf16.msra.mxu2 %v3318_v6  ;;  %3361 = vmatpush.bf16.msra.mxu3 %v3318_v6 }
  0x1e   :  { %1127 = vmatpush.bf16.msra.mxu0 %v3317_v7  ;;  %3362 = vmatpush.bf16.msra.mxu1 %v3317_v7 }
  0x1f   :  { %3363 = vmatpush.bf16.msra.mxu2 %v3317_v7  ;;  %3364 = vmatpush.bf16.msra.mxu3 %v3317_v7 }
  0x21   :  { %1128 = vmatmul.bf16.vlgmr.msra.gmra.mxu0 %v3189_v8  ;;  %1293 = vmatmul.bf16.vlgmr.msra.gmra.mxu1 %v3222_v9 }
  0x22   :  { %1453 = vmatmul.bf16.vlgmr.msra.gmra.mxu2 %v3254_v10  ;;  %1603 = vmatmul.bf16.vlgmr.msra.gmra.mxu3 %v3284_v11 }
  0x31   :  { %1133 = vmatmul.bf16.gmra.mxu0 %v3190_v12  ;;  %1298 = vmatmul.bf16.gmra.mxu1 %v3223_v13  ;;  %v3199_v13 = vld [vmem:[%s4439_s0 + $0x50] sm:$0xff] }
  0x32   :  { %1458 = vmatmul.bf16.gmra.mxu2 %v3255_v14  ;;  %1608 = vmatmul.bf16.gmra.mxu3 %v3285_v15  ;;  %v3232_v14 = vld [vmem:[%s4439_s0 + $0x158] sm:$0xff] }
  0x41   :  { %1138 = vmatmul.bf16.gmra.mxu0 %v3191_v16  ;;  %1303 = vmatmul.bf16.gmra.mxu1 %v3224_v17 }
  0x42   :  { %1463 = vmatmul.bf16.gmra.mxu2 %v3256_v18  ;;  %1613 = vmatmul.bf16.gmra.mxu3 %v3286_v19  ;;  %v3264_v19 = vld [vmem:[%s4439_s0 + $0x258] sm:$0xff] }
  0x51   :  { %1143 = vmatmul.bf16.gmra.mxu0 %v3192_v20  ;;  %1308 = vmatmul.bf16.gmra.mxu1 %v3225_v21  ;;  %v3294_v20 = vld [vmem:[%s4439_s0 + $0x348] sm:$0xff] }
  0x52   :  { %1468 = vmatmul.bf16.gmra.mxu2 %v3257_v22  ;;  %1618 = vmatmul.bf16.gmra.mxu3 %v3287_v23 }
  0x61   :  { %1148 = vmatmul.bf16.gmra.mxu0 %v3193_v24  ;;  %1313 = vmatmul.bf16.gmra.mxu1 %v3226_v25 }
  0x62   :  { %1473 = vmatmul.bf16.gmra.mxu2 %v3258_v26  ;;  %1623 = vmatmul.bf16.gmra.mxu3 %v3288_v27 }
  0x71   :  { %1153 = vmatmul.bf16.gmra.mxu0 %v3194_v28  ;;  %1318 = vmatmul.bf16.gmra.mxu1 %v3227_v29 }
  0x72   :  { %1478 = vmatmul.bf16.gmra.mxu2 %v3259_v30  ;;  %1628 = vmatmul.bf16.gmra.mxu3 %v3289_v31 }
  0x81   :  { %1158 = vmatmul.bf16.gmra.mxu0 %v3195_v32  ;;  %1323 = vmatmul.bf16.gmra.mxu1 %v3228_v33 }
  0x82   :  { %1483 = vmatmul.bf16.gmra.mxu2 %v3260_v34  ;;  %1633 = vmatmul.bf16.gmra.mxu3 %v3290_v35 }
  0x91   :  { %1163 = vmatmul.bf16.gmra.mxu0 %v3196_v36  ;;  %1328 = vmatmul.bf16.gmra.mxu1 %v3229_v37 }
  0x92   :  { %1488 = vmatmul.bf16.gmra.mxu2 %v3261_v38  ;;  %1638 = vmatmul.bf16.gmra.mxu3 %v3291_v39  ;;  %v3200_v38 = vld [vmem:[%s4439_s0 + $0x58] sm:$0xff]  ;;  %v3233_v39 = vld [vmem:[%s4439_s0 + $0x160] sm:$0xff] }
  0x9e   :  { %v1129_v42 = vpop.f32.mrf.mxu0  ;;  %v3547_v43 = vpop.f32.mrf.mxu1 }
  0x9f   :  { %v1130_v47 = vadd.f32 %v3558_v46, %v1129_v42 }
  0xa1   :  { %1168 = vmatmul.bf16.gmra.mxu0 %v3197_v40  ;;  %1333 = vmatmul.bf16.gmra.mxu1 %v3230_v41  ;;  %v1769_v53 = vmax.f32 %v1130_v47, 0.0 }
  0xa2   :  { %1493 = vmatmul.bf16.gmra.mxu2 %v3262_v44  ;;  %1643 = vmatmul.bf16.gmra.mxu3 %v3292_v45  ;;  %v3265_v44 = vld [vmem:[%s4439_s0 + $0x260] sm:$0xff]  ;;  %v3295_v45 = vld [vmem:[%s4439_s0 + $0x350] sm:$0xff] }
  0xa5   :  { %v3561_v48 = vpop.f32.mrf.mxu2  ;;  %v3563_v49 = vpop.f32.mrf.mxu3 }
  0xa6   :  { %v1131_v50 = vpop.f32.mrf.mxu0  ;;  %v3565_v51 = vpop.f32.mrf.mxu1 }
  0xa7   :  { %v1132_v52 = vadd.f32 %v3558_v46, %v1131_v50 }
  0xa9   :  { %v1770_v54 = vmax.f32 %v1132_v52, 0.0 }
  0xab   :  { %v2025_v55 = vadd.f32 %v1770_v54, %v1769_v53 }
  0xad   :  { %v3568_v56 = vpop.f32.mrf.mxu2  ;;  %v3570_v57 = vpop.f32.mrf.mxu3 }
  0xae   :  { %v1134_v60 = vpop.f32.mrf.mxu0  ;;  %v3578_v61 = vpop.f32.mrf.mxu1 }
  0xaf   :  { %v1135_v0 = vadd.f32 %v3558_v46, %v1134_v60 }
  0xb1   :  { %v1771_v1 = vmax.f32 %v1135_v0, 0.0  ;;  %1173 = vmatmul.bf16.gmra.mxu0 %v3198_v58  ;;  %1338 = vmatmul.bf16.gmra.mxu1 %v3231_v59 }
  0xb2   :  { %1498 = vmatmul.bf16.gmra.mxu2 %v3263_v62  ;;  %1648 = vmatmul.bf16.gmra.mxu3 %v3293_v63 }
  0xb3   :  { %v2026_v2 = vadd.f32 %v2025_v55, %v1771_v1 }
  0xb5   :  { %v3587_v3 = vpop.f32.mrf.mxu2  ;;  %v1609_v4 = vpop.f32.mrf.mxu3 }
  0xb6   :  { %v1136_v5 = vpop.f32.mrf.mxu0  ;;  %v3589_v6 = vpop.f32.mrf.mxu1  ;;  %v1610_v9 = vadd.f32 %v3558_v46, %v1609_v4 }
  0xb7   :  { %v1137_v7 = vadd.f32 %v3558_v46, %v1136_v5 }
  0xb8   :  { %v1961_v15 = vmax.f32 %v1610_v9, 0.0  ;;  %v3234_v9 = vld [vmem:[%s4439_s0 + $0x168] sm:$0xff] }
  0xb9   :  { %v1772_v8 = vmax.f32 %v1137_v7, 0.0 }
  0xbb   :  { %v2027_v10 = vadd.f32 %v2026_v2, %v1772_v8  ;;  %v3201_v8 = vld [vmem:[%s4439_s0 + $0x60] sm:$0xff] }
  0xbd   :  { %v3593_v11 = vpop.f32.mrf.mxu2  ;;  %v1611_v12 = vpop.f32.mrf.mxu3 }
  0xbe   :  { %v1612_v16 = vadd.f32 %v3558_v46, %v1611_v12  ;;  %v1139_v17 = vpop.f32.mrf.mxu0  ;;  %v3602_v18 = vpop.f32.mrf.mxu1 }
  0xbf   :  { %v1140_v21 = vadd.f32 %v3558_v46, %v1139_v17 }
  0xc0   :  { %v1962_v22 = vmax.f32 %v1612_v16, 0.0 }
  0xc1   :  { %v1773_v23 = vmax.f32 %v1140_v21, 0.0  ;;  %1178 = vmatmul.bf16.gmra.mxu0 %v3199_v13  ;;  %1343 = vmatmul.bf16.gmra.mxu1 %v3232_v14  ;;  %v3266_v14 = vld [vmem:[%s4439_s0 + $0x268] sm:$0xff] }
  0xc2   :  { %v2247_v24 = vadd.f32 %v1962_v22, %v1961_v15  ;;  %1503 = vmatmul.bf16.gmra.mxu2 %v3264_v19  ;;  %1653 = vmatmul.bf16.gmra.mxu3 %v3294_v20  ;;  %v3296_v15 = vld [vmem:[%s4439_s0 + $0x358] sm:$0xff] }
  0xc3   :  { %v2028_v25 = vadd.f32 %v2027_v10, %v1773_v23  ;;  %v3332_v22 = vld [vmem:[%s4440_s3 + $0x38] sm:$0xff] }
  0xc4   :  { %2461 = vmatpush.bf16.msrb.mxu1 %v3332_v22 }
  0xc5   :  { %v3611_v26 = vpop.f32.mrf.mxu2  ;;  %v1614_v27 = vpop.f32.mrf.mxu3 }
  0xc6   :  { %v1615_v28 = vadd.f32 %v3558_v46, %v1614_v27  ;;  %v1141_v29 = vpop.f32.mrf.mxu0  ;;  %v3614_v30 = vpop.f32.mrf.mxu1 }
  0xc7   :  { %v1142_v31 = vadd.f32 %v3558_v46, %v1141_v29 }
  0xc8   :  { %v1963_v32 = vmax.f32 %v1615_v28, 0.0 }
  0xc9   :  { %v1774_v33 = vmax.f32 %v1142_v31, 0.0 }
  0xca   :  { %v2248_v34 = vadd.f32 %v2247_v24, %v1963_v32 }
  0xcb   :  { %v2029_v35 = vadd.f32 %v2028_v25, %v1774_v33 }
  0xcd   :  { %v3617_v36 = vpop.f32.mrf.mxu2  ;;  %v1616_v37 = vpop.f32.mrf.mxu3 }
  0xce   :  { %v1617_v40 = vadd.f32 %v3558_v46, %v1616_v37  ;;  %v1144_v41 = vpop.f32.mrf.mxu0  ;;  %v3626_v42 = vpop.f32.mrf.mxu1 }
  0xcf   :  { %v1145_v47 = vadd.f32 %v3558_v46, %v1144_v41 }
  0xd0   :  { %v1964_v50 = vmax.f32 %v1617_v40, 0.0 }
  0xd1   :  { %v1775_v52 = vmax.f32 %v1145_v47, 0.0  ;;  %1183 = vmatmul.bf16.gmra.mxu0 %v3200_v38  ;;  %1348 = vmatmul.bf16.gmra.mxu1 %v3233_v39  ;;  %v3202_v38 = vld [vmem:[%s4439_s0 + $0x68] sm:$0xff]  ;;  %v3235_v39 = vld [vmem:[%s4439_s0 + $0x170] sm:$0xff]  ;;  %v3297_v47 = vld [vmem:[%s4439_s0 + $0x360] sm:$0xff] }
  0xd2   :  { %v2249_v53 = vadd.f32 %v2248_v34, %v1964_v50  ;;  %1508 = vmatmul.bf16.gmra.mxu2 %v3265_v44  ;;  %1658 = vmatmul.bf16.gmra.mxu3 %v3295_v45  ;;  %v3267_v45 = vld [vmem:[%s4439_s0 + $0x270] sm:$0xff] }
  0xd3   :  { %v2030_v54 = vadd.f32 %v2029_v35, %v1775_v52 }
  0xd5   :  { %v3635_v55 = vpop.f32.mrf.mxu2  ;;  %v1619_v58 = vpop.f32.mrf.mxu3 }
  0xd6   :  { %v1620_v59 = vadd.f32 %v3558_v46, %v1619_v58  ;;  %v1146_v60 = vpop.f32.mrf.mxu0  ;;  %v3638_v62 = vpop.f32.mrf.mxu1 }
  0xd7   :  { %v1147_v63 = vadd.f32 %v3558_v46, %v1146_v60 }
  0xd8   :  { %v1965_v0 = vmax.f32 %v1620_v59, 0.0 }
  0xd9   :  { %v1776_v1 = vmax.f32 %v1147_v63, 0.0 }
  0xda   :  { %v2250_v2 = vadd.f32 %v2249_v53, %v1965_v0 }
  0xdb   :  { %v2031_v4 = vadd.f32 %v2030_v54, %v1776_v1 }
  0xdd   :  { %v3641_v5 = vpop.f32.mrf.mxu2  ;;  %v1621_v7 = vpop.f32.mrf.mxu3 }
  0xde   :  { %v1622_v10 = vadd.f32 %v3558_v46, %v1621_v7  ;;  %v1149_v12 = vpop.f32.mrf.mxu0  ;;  %v3650_v13 = vpop.f32.mrf.mxu1 }
  0xdf   :  { %v1150_v16 = vadd.f32 %v3558_v46, %v1149_v12 }
  0xe0   :  { %v1966_v17 = vmax.f32 %v1622_v10, 0.0 }
  0xe1   :  { %v1777_v19 = vmax.f32 %v1150_v16, 0.0  ;;  %1188 = vmatmul.bf16.gmra.mxu0 %v3201_v8  ;;  %1353 = vmatmul.bf16.gmra.mxu1 %v3234_v9 }
  0xe2   :  { %v2251_v20 = vadd.f32 %v2250_v2, %v1966_v17  ;;  %1513 = vmatmul.bf16.gmra.mxu2 %v3266_v14  ;;  %1663 = vmatmul.bf16.gmra.mxu3 %v3296_v15  ;;  %v3203_v14 = vld [vmem:[%s4439_s0 + $0x70] sm:$0xff]  ;;  %v3236_v15 = vld [vmem:[%s4439_s0 + $0x178] sm:$0xff] }
  0xe3   :  { %v2032_v21 = vadd.f32 %v2031_v4, %v1777_v19 }
  0xe5   :  { %v3662_v23 = vpop.f32.mrf.mxu2  ;;  %v1624_v24 = vpop.f32.mrf.mxu3 }
  0xe6   :  { %v1625_v25 = vadd.f32 %v3558_v46, %v1624_v24  ;;  %v1151_v27 = vpop.f32.mrf.mxu0  ;;  %v3665_v28 = vpop.f32.mrf.mxu1 }
  0xe7   :  { %v1152_v29 = vadd.f32 %v3558_v46, %v1151_v27 }
  0xe8   :  { %v1967_v31 = vmax.f32 %v1625_v25, 0.0 }
  0xe9   :  { %v1778_v32 = vmax.f32 %v1152_v29, 0.0 }
  0xea   :  { %v2252_v33 = vadd.f32 %v2251_v20, %v1967_v31  ;;  %v3268_v20 = vld [vmem:[%s4439_s0 + $0x278] sm:$0xff] }
  0xeb   :  { %v2033_v34 = vadd.f32 %v2032_v21, %v1778_v32  ;;  %v3298_v21 = vld [vmem:[%s4439_s0 + $0x368] sm:$0xff] }
  0xed   :  { %v3668_v35 = vpop.f32.mrf.mxu2  ;;  %v1626_v37 = vpop.f32.mrf.mxu3 }
  0xee   :  { %v1627_v40 = vadd.f32 %v3558_v46, %v1626_v37  ;;  %v1154_v41 = vpop.f32.mrf.mxu0  ;;  %v3677_v44 = vpop.f32.mrf.mxu1 }
  0xef   :  { %v1155_v50 = vadd.f32 %v3558_v46, %v1154_v41 }
  0xf0   :  { %v1968_v52 = vmax.f32 %v1627_v40, 0.0 }
  0xf1   :  { %v1779_v53 = vmax.f32 %v1155_v50, 0.0  ;;  %1193 = vmatmul.bf16.gmra.mxu0 %v3202_v38  ;;  %1358 = vmatmul.bf16.gmra.mxu1 %v3235_v39 }
  0xf2   :  { %v2253_v54 = vadd.f32 %v2252_v33, %v1968_v52  ;;  %1518 = vmatmul.bf16.gmra.mxu2 %v3267_v45  ;;  %1668 = vmatmul.bf16.gmra.mxu3 %v3297_v47  ;;  %v3204_v52 = vld [vmem:[%s4439_s0 + $0x78] sm:$0xff] }
  0xf3   :  { %v2034_v58 = vadd.f32 %v2033_v34, %v1779_v53  ;;  %v3237_v53 = vld [vmem:[%s4439_s0 + $0x180] sm:$0xff] }
  0xf5   :  { %v3686_v59 = vpop.f32.mrf.mxu2  ;;  %v1629_v60 = vpop.f32.mrf.mxu3 }
  0xf6   :  { %v1630_v63 = vadd.f32 %v3558_v46, %v1629_v60  ;;  %v1156_v0 = vpop.f32.mrf.mxu0  ;;  %v3689_v1 = vpop.f32.mrf.mxu1 }
  0xf7   :  { %v1157_v2 = vadd.f32 %v3558_v46, %v1156_v0  ;;  %v3299_v0 = vld [vmem:[%s4439_s0 + $0x370] sm:$0xff] }
  0xf8   :  { %v1969_v4 = vmax.f32 %v1630_v63, 0.0  ;;  %v3269_v63 = vld [vmem:[%s4439_s0 + $0x280] sm:$0xff] }
  0xf9   :  { %v1780_v7 = vmax.f32 %v1157_v2, 0.0 }
  0xfa   :  { %v2254_v8 = vadd.f32 %v2253_v54, %v1969_v4 }
  0xfb   :  { %v2035_v9 = vadd.f32 %v2034_v58, %v1780_v7 }
  0xfd   :  { %v3692_v10 = vpop.f32.mrf.mxu2  ;;  %v1631_v12 = vpop.f32.mrf.mxu3 }
  0xfe   :  { %v1632_v16 = vadd.f32 %v3558_v46, %v1631_v12  ;;  %v1159_v17 = vpop.f32.mrf.mxu0  ;;  %v3701_v19 = vpop.f32.mrf.mxu1 }
  0xff   :  { %4447 = vst [vmem:[#allocation2_spill] sm:$0xff] %v3701_v19  ;;  %v1160_v22 = vadd.f32 %v3558_v46, %v1159_v17 }
 0x100   :  { %v1970_v24 = vmax.f32 %v1632_v16, 0.0 }
 0x101   :  { %v1781_v25 = vmax.f32 %v1160_v22, 0.0  ;;  %1198 = vmatmul.bf16.gmra.mxu0 %v3203_v14  ;;  %1363 = vmatmul.bf16.gmra.mxu1 %v3236_v15 }
 0x102   :  { %v2255_v27 = vadd.f32 %v2254_v8, %v1970_v24  ;;  %1523 = vmatmul.bf16.gmra.mxu2 %v3268_v20  ;;  %1673 = vmatmul.bf16.gmra.mxu3 %v3298_v21 }
 0x103   :  { %v2036_v29 = vadd.f32 %v2035_v9, %v1781_v25 }
 0x105   :  { %v3710_v31 = vpop.f32.mrf.mxu2  ;;  %v1634_v32 = vpop.f32.mrf.mxu3 }
 0x106   :  { %v1635_v33 = vadd.f32 %v3558_v46, %v1634_v32  ;;  %v1161_v34 = vpop.f32.mrf.mxu0  ;;  %v3713_v37 = vpop.f32.mrf.mxu1  ;;  %v3205_v32 = vld [vmem:[%s4439_s0 + $0x80] sm:$0xff] }
 0x107   :  { %4448 = vst [vmem:[#allocation3_spill] sm:$0xff] %v3713_v37  ;;  %v1162_v38 = vadd.f32 %v3558_v46, %v1161_v34 }
 0x108   :  { %v1971_v39 = vmax.f32 %v1635_v33, 0.0  ;;  %v3238_v33 = vld [vmem:[%s4439_s0 + $0x188] sm:$0xff] }
 0x109   :  { %v1782_v40 = vmax.f32 %v1162_v38, 0.0 }
 0x10a   :  { %v2256_v41 = vadd.f32 %v2255_v27, %v1971_v39 }
 0x10b   :  { %v2037_v45 = vadd.f32 %v2036_v29, %v1782_v40  ;;  %v3270_v40 = vld [vmem:[%s4439_s0 + $0x288] sm:$0xff] }
 0x10d   :  { %v3716_v47 = vpop.f32.mrf.mxu2  ;;  %v1636_v50 = vpop.f32.mrf.mxu3 }
 0x10e   :  { %v1637_v54 = vadd.f32 %v3558_v46, %v1636_v50  ;;  %v1164_v58 = vpop.f32.mrf.mxu0  ;;  %v3725_v60 = vpop.f32.mrf.mxu1 }
 0x10f   :  { %4449 = vst [vmem:[#allocation4_spill] sm:$0xff] %v3725_v60  ;;  %v1165_v2 = vadd.f32 %v3558_v46, %v1164_v58  ;;  %v3331_v58 = vld [vmem:[%s4440_s3 + $0x30] sm:$0xff] }
 0x110   :  { %v1972_v4 = vmax.f32 %v1637_v54, 0.0  ;;  %2462 = vmatpush.bf16.msrb.mxu1 %v3331_v58 }
 0x111   :  { %v1783_v7 = vmax.f32 %v1165_v2, 0.0  ;;  %1203 = vmatmul.bf16.gmra.mxu0 %v3204_v52  ;;  %1368 = vmatmul.bf16.gmra.mxu1 %v3237_v53 }
 0x112   :  { %v2257_v8 = vadd.f32 %v2256_v41, %v1972_v4  ;;  %1528 = vmatmul.bf16.gmra.mxu2 %v3269_v63  ;;  %1678 = vmatmul.bf16.gmra.mxu3 %v3299_v0  ;;  %v3300_v41 = vld [vmem:[%s4439_s0 + $0x378] sm:$0xff] }
 0x113   :  { %v2038_v9 = vadd.f32 %v2037_v45, %v1783_v7 }
 0x115   :  { %v3734_v12 = vpop.f32.mrf.mxu2  ;;  %v1639_v14 = vpop.f32.mrf.mxu3 }
 0x116   :  { %v1640_v15 = vadd.f32 %v3558_v46, %v1639_v14  ;;  %v1166_v16 = vpop.f32.mrf.mxu0  ;;  %v3737_v17 = vpop.f32.mrf.mxu1 }
 0x117   :  { %4450 = vst [vmem:[#allocation5_spill] sm:$0xff] %v3737_v17  ;;  %v1167_v20 = vadd.f32 %v3558_v46, %v1166_v16 }
 0x118   :  { %v1973_v21 = vmax.f32 %v1640_v15, 0.0 }
 0x119   :  { %v1784_v22 = vmax.f32 %v1167_v20, 0.0 }
 0x11a   :  { %v2258_v24 = vadd.f32 %v2257_v8, %v1973_v21 }
 0x11b   :  { %v2039_v25 = vadd.f32 %v2038_v9, %v1784_v22  ;;  %v3206_v22 = vld [vmem:[%s4439_s0 + $0x88] sm:$0xff] }
 0x11d   :  { %v3740_v27 = vpop.f32.mrf.mxu2  ;;  %v1641_v29 = vpop.f32.mrf.mxu3 }
 0x11e   :  { %v1642_v34 = vadd.f32 %v3558_v46, %v1641_v29  ;;  %v1169_v38 = vpop.f32.mrf.mxu0  ;;  %v3749_v39 = vpop.f32.mrf.mxu1 }
 0x11f   :  { %4451 = vst [vmem:[#allocation6_spill] sm:$0xff] %v3749_v39  ;;  %v1170_v45 = vadd.f32 %v3558_v46, %v1169_v38 }
 0x120   :  { %v1974_v50 = vmax.f32 %v1642_v34, 0.0  ;;  %v3301_v34 = vld [vmem:[%s4439_s0 + $0x380] sm:$0xff] }
 0x121   :  { %v1785_v52 = vmax.f32 %v1170_v45, 0.0  ;;  %1208 = vmatmul.bf16.gmra.mxu0 %v3205_v32  ;;  %1373 = vmatmul.bf16.gmra.mxu1 %v3238_v33  ;;  %v3271_v33 = vld [vmem:[%s4439_s0 + $0x290] sm:$0xff] }
 0x122   :  { %v2259_v53 = vadd.f32 %v2258_v24, %v1974_v50  ;;  %1533 = vmatmul.bf16.gmra.mxu2 %v3270_v40  ;;  %1683 = vmatmul.bf16.gmra.mxu3 %v3300_v41  ;;  %v3239_v24 = vld [vmem:[%s4439_s0 + $0x190] sm:$0xff] }
 0x123   :  { %v2040_v54 = vadd.f32 %v2039_v25, %v1785_v52 }
 0x125   :  { %v3761_v63 = vpop.f32.mrf.mxu2  ;;  %v1644_v0 = vpop.f32.mrf.mxu3 }
 0x126   :  { %v1645_v2 = vadd.f32 %v3558_v46, %v1644_v0  ;;  %v1171_v4 = vpop.f32.mrf.mxu0  ;;  %v3764_v7 = vpop.f32.mrf.mxu1 }
 0x127   :  { %4452 = vst [vmem:[#allocation7_spill] sm:$0xff] %v3764_v7  ;;  %v1172_v8 = vadd.f32 %v3558_v46, %v1171_v4 }
 0x128   :  { %v1975_v9 = vmax.f32 %v1645_v2, 0.0 }
 0x129   :  { %v1786_v14 = vmax.f32 %v1172_v8, 0.0 }
 0x12a   :  { %v2260_v15 = vadd.f32 %v2259_v53, %v1975_v9 }
 0x12b   :  { %v2041_v16 = vadd.f32 %v2040_v54, %v1786_v14 }
 0x12d   :  { %v3767_v20 = vpop.f32.mrf.mxu2  ;;  %v1646_v21 = vpop.f32.mrf.mxu3 }
 0x12e   :  { %v1647_v25 = vadd.f32 %v3558_v46, %v1646_v21  ;;  %v1174_v29 = vpop.f32.mrf.mxu0  ;;  %v3776_v32 = vpop.f32.mrf.mxu1 }
 0x12f   :  { %4453 = vst [vmem:[#allocation8_spill] sm:$0xff] %v3776_v32  ;;  %v1175_v38 = vadd.f32 %v3558_v46, %v1174_v29 }
 0x130   :  { %v1976_v40 = vmax.f32 %v1647_v25, 0.0 }
 0x131   :  { %v1787_v41 = vmax.f32 %v1175_v38, 0.0  ;;  %1213 = vmatmul.bf16.gmra.mxu0 %v3206_v22  ;;  %1378 = vmatmul.bf16.gmra.mxu1 %v3239_v24  ;;  %v3240_v22 = vld [vmem:[%s4439_s0 + $0x198] sm:$0xff] }
 0x132   :  { %v2261_v45 = vadd.f32 %v2260_v15, %v1976_v40  ;;  %1538 = vmatmul.bf16.gmra.mxu2 %v3271_v33  ;;  %1688 = vmatmul.bf16.gmra.mxu3 %v3301_v34  ;;  %v3272_v33 = vld [vmem:[%s4439_s0 + $0x298] sm:$0xff]  ;;  %v3302_v34 = vld [vmem:[%s4439_s0 + $0x388] sm:$0xff] }
 0x133   :  { %v2042_v50 = vadd.f32 %v2041_v16, %v1787_v41  ;;  %v3207_v16 = vld [vmem:[%s4439_s0 + $0x90] sm:$0xff] }
 0x135   :  { %v3785_v52 = vpop.f32.mrf.mxu2  ;;  %v1649_v53 = vpop.f32.mrf.mxu3 }
 0x136   :  { %4454 = vst [vmem:[#allocation9_spill] sm:$0xff] %v3785_v52  ;;  %v1650_v54 = vadd.f32 %v3558_v46, %v1649_v53  ;;  %v1176_v58 = vpop.f32.mrf.mxu0  ;;  %v3788_v0 = vpop.f32.mrf.mxu1 }
 0x137   :  { %4455 = vst [vmem:[#allocation10_spill] sm:$0xff] %v3788_v0  ;;  %v1177_v2 = vadd.f32 %v3558_v46, %v1176_v58 }
 0x138   :  { %v1977_v4 = vmax.f32 %v1650_v54, 0.0 }
 0x139   :  { %v1788_v8 = vmax.f32 %v1177_v2, 0.0 }
 0x13a   :  { %v2262_v9 = vadd.f32 %v2261_v45, %v1977_v4 }
 0x13b   :  { %v2043_v14 = vadd.f32 %v2042_v50, %v1788_v8 }
 0x13d   :  { %v3791_v21 = vpop.f32.mrf.mxu2  ;;  %v1651_v15 = vpop.f32.mrf.mxu3 }
 0x13e   :  { %4456 = vst [vmem:[#allocation11_spill] sm:$0xff] %v3791_v21  ;;  %v1652_v24 = vadd.f32 %v3558_v46, %v1651_v15  ;;  %v1179_v25 = vpop.f32.mrf.mxu0  ;;  %v3800_v29 = vpop.f32.mrf.mxu1 }
 0x13f   :  { %4457 = vst [vmem:[#allocation12_spill] sm:$0xff] %v3800_v29  ;;  %v1180_v38 = vadd.f32 %v3558_v46, %v1179_v25 }
 0x140   :  { %v1978_v40 = vmax.f32 %v1652_v24, 0.0 }
 0x141   :  { %v1789_v41 = vmax.f32 %v1180_v38, 0.0  ;;  %1218 = vmatmul.bf16.gmra.mxu0 %v3207_v16  ;;  %1383 = vmatmul.bf16.gmra.mxu1 %v3240_v22  ;;  %v3241_v22 = vld [vmem:[%s4439_s0 + $0x1a0] sm:$0xff] }
 0x142   :  { %v2263_v45 = vadd.f32 %v2262_v9, %v1978_v40  ;;  %1543 = vmatmul.bf16.gmra.mxu2 %v3272_v33  ;;  %1693 = vmatmul.bf16.gmra.mxu3 %v3302_v34 }
 0x143   :  { %v2044_v50 = vadd.f32 %v2043_v14, %v1789_v41  ;;  %v3208_v14 = vld [vmem:[%s4439_s0 + $0x98] sm:$0xff]  ;;  %v3273_v41 = vld [vmem:[%s4439_s0 + $0x2a0] sm:$0xff] }
 0x145   :  { %v3809_v53 = vpop.f32.mrf.mxu2  ;;  %v1654_v54 = vpop.f32.mrf.mxu3 }
 0x146   :  { %4458 = vst [vmem:[#allocation13_spill] sm:$0xff] %v3809_v53  ;;  %v1655_v58 = vadd.f32 %v3558_v46, %v1654_v54  ;;  %v1181_v2 = vpop.f32.mrf.mxu0  ;;  %v3812_v4 = vpop.f32.mrf.mxu1 }
 0x147   :  { %4459 = vst [vmem:[#allocation14_spill] sm:$0xff] %v3812_v4  ;;  %v1182_v8 = vadd.f32 %v3558_v46, %v1181_v2 }
 0x148   :  { %v1979_v15 = vmax.f32 %v1655_v58, 0.0 }
 0x149   :  { %v1790_v25 = vmax.f32 %v1182_v8, 0.0 }
 0x14a   :  { %v2264_v24 = vadd.f32 %v2263_v45, %v1979_v15  ;;  %v3303_v45 = vld [vmem:[%s4439_s0 + $0x390] sm:$0xff] }
 0x14b   :  { %v2045_v38 = vadd.f32 %v2044_v50, %v1790_v25 }
 0x14d   :  { %v3815_v16 = vpop.f32.mrf.mxu2  ;;  %v1656_v9 = vpop.f32.mrf.mxu3 }
 0x14e   :  { %4460 = vst [vmem:[#allocation15_spill] sm:$0xff] %v3815_v16  ;;  %v1657_v33 = vadd.f32 %v3558_v46, %v1656_v9  ;;  %v1184_v34 = vpop.f32.mrf.mxu0  ;;  %v3824_v40 = vpop.f32.mrf.mxu1 }
 0x14f   :  { %4461 = vst [vmem:[#allocation16_spill] sm:$0xff] %v3824_v40  ;;  %v1185_v50 = vadd.f32 %v3558_v46, %v1184_v34 }
 0x150   :  { %v1980_v54 = vmax.f32 %v1657_v33, 0.0 }
 0x151   :  { %v1791_v58 = vmax.f32 %v1185_v50, 0.0  ;;  %1223 = vmatmul.bf16.gmra.mxu0 %v3208_v14  ;;  %1388 = vmatmul.bf16.gmra.mxu1 %v3241_v22  ;;  %v3242_v22 = vld [vmem:[%s4439_s0 + $0x1a8] sm:$0xff] }
 0x152   :  { %v2265_v2 = vadd.f32 %v2264_v24, %v1980_v54  ;;  %1548 = vmatmul.bf16.gmra.mxu2 %v3273_v41  ;;  %1698 = vmatmul.bf16.gmra.mxu3 %v3303_v45 }
 0x153   :  { %v2046_v8 = vadd.f32 %v2045_v38, %v1791_v58  ;;  %v3209_v38 = vld [vmem:[%s4439_s0 + $0xa0] sm:$0xff] }
 0x155   :  { %v3833_v15 = vpop.f32.mrf.mxu2  ;;  %v1659_v25 = vpop.f32.mrf.mxu3 }
 0x156   :  { %4462 = vst [vmem:[#allocation17_spill] sm:$0xff] %v3833_v15  ;;  %v1660_v9 = vadd.f32 %v3558_v46, %v1659_v25  ;;  %v1186_v40 = vpop.f32.mrf.mxu0  ;;  %v3836_v4 = vpop.f32.mrf.mxu1 }
 0x157   :  { %4463 = vst [vmem:[#allocation18_spill] sm:$0xff] %v3836_v4  ;;  %v1187_v29 = vadd.f32 %v3558_v46, %v1186_v40 }
 0x158   :  { %v1981_v0 = vmax.f32 %v1660_v9, 0.0  ;;  %v3330_v9 = vld [vmem:[%s4440_s3 + $0x28] sm:$0xff] }
 0x159   :  { %v1792_v34 = vmax.f32 %v1187_v29, 0.0  ;;  %v3304_v29 = vld [vmem:[%s4439_s0 + $0x398] sm:$0xff]  ;;  %2463 = vmatpush.bf16.msrb.mxu1 %v3330_v9 }
 0x15a   :  { %v2266_v33 = vadd.f32 %v2265_v2, %v1981_v0  ;;  %v3274_v0 = vld [vmem:[%s4439_s0 + $0x2a8] sm:$0xff] }
 0x15b   :  { %v2047_v50 = vadd.f32 %v2046_v8, %v1792_v34 }
 0x15d   :  { %v3839_v14 = vpop.f32.mrf.mxu2  ;;  %v1661_v24 = vpop.f32.mrf.mxu3 }
 0x15e   :  { %4464 = vst [vmem:[#allocation19_spill] sm:$0xff] %v3839_v14  ;;  %v1662_v41 = vadd.f32 %v3558_v46, %v1661_v24  ;;  %v1189_v45 = vpop.f32.mrf.mxu0  ;;  %v3848_v54 = vpop.f32.mrf.mxu1 }
 0x15f   :  { %4465 = vst [vmem:[#allocation20_spill] sm:$0xff] %v3848_v54  ;;  %v1190_v40 = vadd.f32 %v3558_v46, %v1189_v45 }
 0x160   :  { %v1982_v58 = vmax.f32 %v1662_v41, 0.0 }
 0x161   :  { %v1793_v2 = vmax.f32 %v1190_v40, 0.0  ;;  %1228 = vmatmul.bf16.gmra.mxu0 %v3209_v38  ;;  %1393 = vmatmul.bf16.gmra.mxu1 %v3242_v22  ;;  %v3210_v40 = vld [vmem:[%s4439_s0 + $0xa8] sm:$0xff] }
 0x162   :  { %v2267_v8 = vadd.f32 %v2266_v33, %v1982_v58  ;;  %1553 = vmatmul.bf16.gmra.mxu2 %v3274_v0  ;;  %1703 = vmatmul.bf16.gmra.mxu3 %v3304_v29  ;;  %v3243_v58 = vld [vmem:[%s4439_s0 + $0x1b0] sm:$0xff] }
 0x163   :  { %v2048_v25 = vadd.f32 %v2047_v50, %v1793_v2 }
 0x165   :  { %v3860_v34 = vpop.f32.mrf.mxu2  ;;  %v1664_v24 = vpop.f32.mrf.mxu3 }
 0x166   :  { %4466 = vst [vmem:[#allocation21_spill] sm:$0xff] %v3860_v34  ;;  %v1665_v54 = vadd.f32 %v3558_v46, %v1664_v24  ;;  %v1191_v4 = vpop.f32.mrf.mxu0  ;;  %v3863_v45 = vpop.f32.mrf.mxu1 }
 0x167   :  { %4467 = vst [vmem:[#allocation22_spill] sm:$0xff] %v3863_v45  ;;  %v1192_v38 = vadd.f32 %v3558_v46, %v1191_v4  ;;  %v3275_v4 = vld [vmem:[%s4439_s0 + $0x2b0] sm:$0xff] }
 0x168   :  { %v1983_v22 = vmax.f32 %v1665_v54, 0.0  ;;  %v3305_v54 = vld [vmem:[%s4439_s0 + $0x3a0] sm:$0xff] }
 0x169   :  { %v1794_v33 = vmax.f32 %v1192_v38, 0.0 }
 0x16a   :  { %v2268_v41 = vadd.f32 %v2267_v8, %v1983_v22 }
 0x16b   :  { %v2049_v0 = vadd.f32 %v2048_v25, %v1794_v33 }
 0x16d   :  { %v3866_v50 = vpop.f32.mrf.mxu2  ;;  %v1666_v29 = vpop.f32.mrf.mxu3 }
 0x16e   :  { %4468 = vst [vmem:[#allocation23_spill] sm:$0xff] %v3866_v50  ;;  %v1667_v2 = vadd.f32 %v3558_v46, %v1666_v29  ;;  %v1194_v9 = vpop.f32.mrf.mxu0  ;;  %v3875_v24 = vpop.f32.mrf.mxu1 }
 0x16f   :  { %4469 = vst [vmem:[#allocation24_spill] sm:$0xff] %v3875_v24  ;;  %v1195_v8 = vadd.f32 %v3558_v46, %v1194_v9 }
 0x170   :  { %v1984_v25 = vmax.f32 %v1667_v2, 0.0 }
 0x171   :  { %v1795_v38 = vmax.f32 %v1195_v8, 0.0  ;;  %1233 = vmatmul.bf16.gmra.mxu0 %v3210_v40  ;;  %1398 = vmatmul.bf16.gmra.mxu1 %v3243_v58  ;;  %v3244_v58 = vld [vmem:[%s4439_s0 + $0x1b8] sm:$0xff] }
 0x172   :  { %v2269_v22 = vadd.f32 %v2268_v41, %v1984_v25  ;;  %1558 = vmatmul.bf16.gmra.mxu2 %v3275_v4  ;;  %1708 = vmatmul.bf16.gmra.mxu3 %v3305_v54 }
 0x173   :  { %v2050_v33 = vadd.f32 %v2049_v0, %v1795_v38  ;;  %v3211_v0 = vld [vmem:[%s4439_s0 + $0xb0] sm:$0xff] }
 0x175   :  { %v3884_v29 = vpop.f32.mrf.mxu2  ;;  %v1669_v24 = vpop.f32.mrf.mxu3 }
 0x176   :  { %4470 = vst [vmem:[#allocation25_spill] sm:$0xff] %v3884_v29  ;;  %v1670_v45 = vadd.f32 %v3558_v46, %v1669_v24  ;;  %v1196_v50 = vpop.f32.mrf.mxu0  ;;  %v3887_v34 = vpop.f32.mrf.mxu1 }
 0x177   :  { %4471 = vst [vmem:[#allocation26_spill] sm:$0xff] %v3887_v34  ;;  %v1197_v32 = vadd.f32 %v3558_v46, %v1196_v50 }
 0x178   :  { %v1985_v14 = vmax.f32 %v1670_v45, 0.0 }
 0x179   :  { %v1796_v9 = vmax.f32 %v1197_v32, 0.0  ;;  %v3276_v32 = vld [vmem:[%s4439_s0 + $0x2b8] sm:$0xff] }
 0x17a   :  { %v2270_v2 = vadd.f32 %v2269_v22, %v1985_v14  ;;  %v3306_v14 = vld [vmem:[%s4439_s0 + $0x3a8] sm:$0xff] }
 0x17b   :  { %v2051_v8 = vadd.f32 %v2050_v33, %v1796_v9 }
 0x17d   :  { %v3890_v40 = vpop.f32.mrf.mxu2  ;;  %v1671_v41 = vpop.f32.mrf.mxu3 }
 0x17e   :  { %4472 = vst [vmem:[#allocation27_spill] sm:$0xff] %v3890_v40  ;;  %v1672_v24 = vadd.f32 %v3558_v46, %v1671_v41  ;;  %v1199_v4 = vpop.f32.mrf.mxu0  ;;  %v3899_v54 = vpop.f32.mrf.mxu1 }
 0x17f   :  { %4473 = vst [vmem:[#allocation28_spill] sm:$0xff] %v3899_v54  ;;  %v1200_v45 = vadd.f32 %v3558_v46, %v1199_v4 }
 0x180   :  { %v1986_v50 = vmax.f32 %v1672_v24, 0.0 }
 0x181   :  { %v1797_v25 = vmax.f32 %v1200_v45, 0.0  ;;  %1238 = vmatmul.bf16.gmra.mxu0 %v3211_v0  ;;  %1403 = vmatmul.bf16.gmra.mxu1 %v3244_v58  ;;  %v3245_v58 = vld [vmem:[%s4439_s0 + $0x1c0] sm:$0xff] }
 0x182   :  { %v2271_v38 = vadd.f32 %v2270_v2, %v1986_v50  ;;  %1563 = vmatmul.bf16.gmra.mxu2 %v3276_v32  ;;  %1713 = vmatmul.bf16.gmra.mxu3 %v3306_v14  ;;  %v3340_v32 = vld [vmem:[%s4441_s5 + $0x38] sm:$0xff]  ;;  %v3277_v14 = vld [vmem:[%s4439_s0 + $0x2c0] sm:$0xff]  ;;  %v3307_v50 = vld [vmem:[%s4439_s0 + $0x3b0] sm:$0xff] }
 0x183   :  { %v2052_v22 = vadd.f32 %v2051_v8, %v1797_v25  ;;  %v3212_v8 = vld [vmem:[%s4439_s0 + $0xb8] sm:$0xff]  ;;  %2544 = vmatpush.bf16.msrb.mxu2 %v3340_v32 }
 0x185   :  { %v3908_v33 = vpop.f32.mrf.mxu2  ;;  %v1674_v9 = vpop.f32.mrf.mxu3 }
 0x186   :  { %4474 = vst [vmem:[#allocation29_spill] sm:$0xff] %v3908_v33  ;;  %v1675_v41 = vadd.f32 %v3558_v46, %v1674_v9  ;;  %v1201_v54 = vpop.f32.mrf.mxu0  ;;  %v3911_v34 = vpop.f32.mrf.mxu1 }
 0x187   :  { %4475 = vst [vmem:[#allocation30_spill] sm:$0xff] %v3911_v34  ;;  %v1202_v40 = vadd.f32 %v3558_v46, %v1201_v54 }
 0x188   :  { %v1987_v29 = vmax.f32 %v1675_v41, 0.0 }
 0x189   :  { %v1798_v4 = vmax.f32 %v1202_v40, 0.0 }
 0x18a   :  { %v2272_v24 = vadd.f32 %v2271_v38, %v1987_v29 }
 0x18b   :  { %v2053_v45 = vadd.f32 %v2052_v22, %v1798_v4 }
 0x18d   :  { %v3914_v0 = vpop.f32.mrf.mxu2  ;;  %v1676_v2 = vpop.f32.mrf.mxu3 }
 0x18e   :  { %4476 = vst [vmem:[#allocation31_spill] sm:$0xff] %v3914_v0  ;;  %v1677_v54 = vadd.f32 %v3558_v46, %v1676_v2  ;;  %v1204_v40 = vpop.f32.mrf.mxu0  ;;  %v1369_v29 = vpop.f32.mrf.mxu1 }
 0x18f   :  { %v1205_v25 = vadd.f32 %v3558_v46, %v1204_v40  ;;  %v1370_v4 = vadd.f32 %v3558_v46, %v1369_v29 }
 0x190   :  { %v1988_v38 = vmax.f32 %v1677_v54, 0.0 }
 0x191   :  { %v1799_v22 = vmax.f32 %v1205_v25, 0.0  ;;  %1243 = vmatmul.bf16.gmra.mxu0 %v3212_v8  ;;  %1408 = vmatmul.bf16.gmra.mxu1 %v3245_v58  ;;  %v1865_v16 = vmax.f32 %v1370_v4, 0.0 }
 0x192   :  { %v2273_v9 = vadd.f32 %v2272_v24, %v1988_v38  ;;  %1568 = vmatmul.bf16.gmra.mxu2 %v3277_v14  ;;  %1718 = vmatmul.bf16.gmra.mxu3 %v3307_v50 }
 0x193   :  { %v2054_v41 = vadd.f32 %v2053_v45, %v1799_v22 }
 0x195   :  { %v1529_v2 = vpop.f32.mrf.mxu2  ;;  %v1679_v34 = vpop.f32.mrf.mxu3 }
 0x196   :  { %v1680_v0 = vadd.f32 %v3558_v46, %v1679_v34  ;;  %v1206_v33 = vpop.f32.mrf.mxu0  ;;  %v1371_v15 = vpop.f32.mrf.mxu1  ;;  %v1530_v24 = vadd.f32 %v3558_v46, %v1529_v2  ;;  %v3213_v34 = vld [vmem:[%s4439_s0 + $0xc0] sm:$0xff] }
 0x197   :  { %v1207_v40 = vadd.f32 %v3558_v46, %v1206_v33  ;;  %v1372_v32 = vadd.f32 %v3558_v46, %v1371_v15  ;;  %v3246_v33 = vld [vmem:[%s4439_s0 + $0x1c8] sm:$0xff] }
 0x198   :  { %v1989_v54 = vmax.f32 %v1680_v0, 0.0  ;;  %v1929_v15 = vmax.f32 %v1530_v24, 0.0  ;;  %v3329_v24 = vld [vmem:[%s4440_s3 + $0x20] sm:$0xff] }
 0x199   :  { %v1800_v8 = vmax.f32 %v1207_v40, 0.0  ;;  %v1866_v58 = vmax.f32 %v1372_v32, 0.0  ;;  %2464 = vmatpush.bf16.msrb.mxu1 %v3329_v24 }
 0x19a   :  { %v2274_v14 = vadd.f32 %v2273_v9, %v1989_v54 }
 0x19b   :  { %v3938_v45 = vadd.f32 %v2054_v41, %v1800_v8  ;;  %v2136_v29 = vadd.f32 %v1866_v58, %v1865_v16  ;;  %v3278_v16 = vld [vmem:[%s4439_s0 + $0x2c8] sm:$0xff]  ;;  %v3308_v41 = vld [vmem:[%s4439_s0 + $0x3b8] sm:$0xff] }
 0x19d   :  { %v1531_v50 = vpop.f32.mrf.mxu2  ;;  %v1681_v25 = vpop.f32.mrf.mxu3 }
 0x19e   :  { %v1532_v0 = vadd.f32 %v3558_v46, %v1531_v50  ;;  %v1682_v38 = vadd.f32 %v3558_v46, %v1681_v25  ;;  %v1209_v22 = vpop.f32.mrf.mxu0  ;;  %v1374_v9 = vpop.f32.mrf.mxu1 }
 0x19f   :  { %v1375_v4 = vadd.f32 %v3558_v46, %v1374_v9  ;;  %v1210_v50 = vadd.f32 %v3558_v46, %v1209_v22 }
 0x1a0   :  { %v1930_v2 = vmax.f32 %v1532_v0, 0.0  ;;  %v1990_v40 = vmax.f32 %v1682_v38, 0.0 }
 0x1a1   :  { %v1867_v32 = vmax.f32 %v1375_v4, 0.0  ;;  %1248 = vmatmul.bf16.gmra.mxu0 %v3213_v34  ;;  %1413 = vmatmul.bf16.gmra.mxu1 %v3246_v33 }
 0x1a2   :  { %v2210_v54 = vadd.f32 %v1930_v2, %v1929_v15  ;;  %v2275_v8 = vadd.f32 %v2274_v14, %v1990_v40  ;;  %1573 = vmatmul.bf16.gmra.mxu2 %v3278_v16  ;;  %1723 = vmatmul.bf16.gmra.mxu3 %v3308_v41  ;;  %v1801_v16 = vmax.f32 %v1210_v50, 0.0 }
 0x1a3   :  { %v2137_v58 = vadd.f32 %v2136_v29, %v1867_v32 }
 0x1a5   :  { %v1534_v25 = vpop.f32.mrf.mxu2  ;;  %v1684_v7 = vpop.f32.mrf.mxu3 }
 0x1a6   :  { %v1535_v0 = vadd.f32 %v3558_v46, %v1534_v25  ;;  %v1685_v38 = vadd.f32 %v3558_v46, %v1684_v7  ;;  %v1211_v34 = vpop.f32.mrf.mxu0  ;;  %v1376_v33 = vpop.f32.mrf.mxu1  ;;  %v3214_v7 = vld [vmem:[%s4439_s0 + $0xc8] sm:$0xff]  ;;  %v3247_v25 = vld [vmem:[%s4439_s0 + $0x1d0] sm:$0xff] }
 0x1a7   :  { %v1212_v14 = vadd.f32 %v3558_v46, %v1211_v34  ;;  %v1377_v15 = vadd.f32 %v3558_v46, %v1376_v33 }
 0x1a8   :  { %v1931_v29 = vmax.f32 %v1535_v0, 0.0  ;;  %v1991_v9 = vmax.f32 %v1685_v38, 0.0 }
 0x1a9   :  { %v1802_v41 = vmax.f32 %v1212_v14, 0.0  ;;  %v1868_v4 = vmax.f32 %v1377_v15, 0.0 }
 0x1aa   :  { %v2211_v2 = vadd.f32 %v2210_v54, %v1931_v29  ;;  %v2276_v22 = vadd.f32 %v2275_v8, %v1991_v9  ;;  %v3279_v54 = vld [vmem:[%s4439_s0 + $0x2d0] sm:$0xff]  ;;  %v3309_v8 = vld [vmem:[%s4439_s0 + $0x3c0] sm:$0xff] }
 0x1ab   :  { %v2062_v40 = vadd.f32 %v1802_v41, %v1801_v16  ;;  %v2138_v32 = vadd.f32 %v2137_v58, %v1868_v4 }
 0x1ad   :  { %v1536_v24 = vpop.f32.mrf.mxu2  ;;  %v1686_v39 = vpop.f32.mrf.mxu3 }
 0x1ae   :  { %v1537_v0 = vadd.f32 %v3558_v46, %v1536_v24  ;;  %v1687_v50 = vadd.f32 %v3558_v46, %v1686_v39  ;;  %v1214_v38 = vpop.f32.mrf.mxu0  ;;  %v1379_v34 = vpop.f32.mrf.mxu1 }
 0x1af   :  { %v1215_v58 = vadd.f32 %v3558_v46, %v1214_v38  ;;  %v1380_v33 = vadd.f32 %v3558_v46, %v1379_v34  ;;  %v3984_v38 = vld [vmem:[%s4438_s2] ss:$0 sm:$0xff] }
 0x1b0   :  { %v1932_v14 = vmax.f32 %v1537_v0, 0.0  ;;  %v1992_v15 = vmax.f32 %v1687_v50, 0.0 }
 0x1b1   :  { %v1803_v29 = vmax.f32 %v1215_v58, 0.0  ;;  %v1869_v9 = vmax.f32 %v1380_v33, 0.0  ;;  %1253 = vmatmul.bf16.gmra.mxu0 %v3214_v7  ;;  %1418 = vmatmul.bf16.gmra.mxu1 %v3247_v25 }
 0x1b2   :  { %v2212_v39 = vadd.f32 %v2211_v2, %v1932_v14  ;;  %v3979_v16 = vadd.f32 %v2276_v22, %v1992_v15  ;;  %1578 = vmatmul.bf16.gmra.mxu2 %v3279_v54  ;;  %1728 = vmatmul.bf16.gmra.mxu3 %v3309_v8  ;;  %v3215_v14 = vld [vmem:[%s4439_s0 + $0xd0] sm:$0xff]  ;;  %v3248_v15 = vld [vmem:[%s4439_s0 + $0x1d8] sm:$0xff] }
 0x1b3   :  { %v2063_v41 = vadd.f32 %v2062_v40, %v1803_v29  ;;  %v2139_v4 = vadd.f32 %v2138_v32, %v1869_v9 }
 0x1b4   :  { %4477 = vst [vmem:[#allocation32_spill] sm:$0xff] %v3979_v16 }
 0x1b5   :  { %v1539_v24 = vpop.f32.mrf.mxu2  ;;  %v1689_v53 = vpop.f32.mrf.mxu3 }
 0x1b6   :  { %v1540_v46 = vadd.f32 %v3984_v38, %v1539_v24  ;;  %v1216_v0 = vpop.f32.mrf.mxu0  ;;  %v1381_v50 = vpop.f32.mrf.mxu1  ;;  %v1690_v32 = vadd.f32 %v3984_v38, %v1689_v53  ;;  %v3280_v53 = vld [vmem:[%s4439_s0 + $0x2d8] sm:$0xff] }
 0x1b7   :  { %v1217_v7 = vadd.f32 %v3984_v38, %v1216_v0  ;;  %v1382_v2 = vadd.f32 %v3984_v38, %v1381_v50 }
 0x1b8   :  { %v1933_v22 = vmax.f32 %v1540_v46, 0.0  ;;  %v1993_v29 = vmax.f32 %v1690_v32, 0.0 }
 0x1b9   :  { %v1804_v25 = vmax.f32 %v1217_v7, 0.0  ;;  %v1870_v34 = vmax.f32 %v1382_v2, 0.0 }
 0x1ba   :  { %v2213_v40 = vadd.f32 %v2212_v39, %v1933_v22 }
 0x1bb   :  { %v2064_v54 = vadd.f32 %v2063_v41, %v1804_v25  ;;  %v2140_v8 = vadd.f32 %v2139_v4, %v1870_v34  ;;  %v3310_v41 = vld [vmem:[%s4439_s0 + $0x3c8] sm:$0xff] }
 0x1bd   :  { %v1541_v58 = vpop.f32.mrf.mxu2  ;;  %v1691_v33 = vpop.f32.mrf.mxu3 }
 0x1be   :  { %v1542_v9 = vadd.f32 %v3984_v38, %v1541_v58  ;;  %v1692_v24 = vadd.f32 %v3984_v38, %v1691_v33  ;;  %v1219_v39 = vpop.f32.mrf.mxu0  ;;  %v1384_v46 = vpop.f32.mrf.mxu1  ;;  %v3339_v33 = vld [vmem:[%s4441_s5 + $0x30] sm:$0xff] }
 0x1bf   :  { %v1220_v4 = vadd.f32 %v3984_v38, %v1219_v39  ;;  %v1385_v0 = vadd.f32 %v3984_v38, %v1384_v46  ;;  %2545 = vmatpush.bf16.msrb.mxu2 %v3339_v33 }
 0x1c0   :  { %v1934_v50 = vmax.f32 %v1542_v9, 0.0  ;;  %v1994_v7 = vmax.f32 %v1692_v24, 0.0 }
 0x1c1   :  { %v1805_v2 = vmax.f32 %v1220_v4, 0.0  ;;  %v1871_v22 = vmax.f32 %v1385_v0, 0.0  ;;  %1258 = vmatmul.bf16.gmra.mxu0 %v3215_v14  ;;  %1423 = vmatmul.bf16.gmra.mxu1 %v3248_v15 }
 0x1c2   :  { %v2214_v25 = vadd.f32 %v2213_v40, %v1934_v50  ;;  %v2284_v34 = vadd.f32 %v1994_v7, %v1993_v29  ;;  %1583 = vmatmul.bf16.gmra.mxu2 %v3280_v53  ;;  %1733 = vmatmul.bf16.gmra.mxu3 %v3310_v41 }
 0x1c3   :  { %v2065_v32 = vadd.f32 %v2064_v54, %v1805_v2  ;;  %v2141_v58 = vadd.f32 %v2140_v8, %v1871_v22  ;;  %v3249_v22 = vld [vmem:[%s4439_s0 + $0x1e0] sm:$0xff] }
 0x1c5   :  { %v1544_v16 = vpop.f32.mrf.mxu2  ;;  %v1694_v39 = vpop.f32.mrf.mxu3 }
 0x1c6   :  { %v1545_v9 = vadd.f32 %v3984_v38, %v1544_v16  ;;  %v1695_v24 = vadd.f32 %v3984_v38, %v1694_v39  ;;  %v1221_v46 = vpop.f32.mrf.mxu0  ;;  %v1386_v14 = vpop.f32.mrf.mxu1  ;;  %v3216_v16 = vld [vmem:[%s4439_s0 + $0xd8] sm:$0xff] }
 0x1c7   :  { %v1222_v40 = vadd.f32 %v3984_v38, %v1221_v46  ;;  %v1387_v15 = vadd.f32 %v3984_v38, %v1386_v14 }
 0x1c8   :  { %v1935_v29 = vmax.f32 %v1545_v9, 0.0  ;;  %v1995_v54 = vmax.f32 %v1695_v24, 0.0 }
 0x1c9   :  { %v1806_v8 = vmax.f32 %v1222_v40, 0.0  ;;  %v1872_v53 = vmax.f32 %v1387_v15, 0.0 }
 0x1ca   :  { %v2215_v41 = vadd.f32 %v2214_v25, %v1935_v29  ;;  %v2285_v4 = vadd.f32 %v2284_v34, %v1995_v54  ;;  %v3281_v25 = vld [vmem:[%s4439_s0 + $0x2e0] sm:$0xff]  ;;  %v3311_v34 = vld [vmem:[%s4439_s0 + $0x3d0] sm:$0xff] }
 0x1cb   :  { %v2066_v0 = vadd.f32 %v2065_v32, %v1806_v8  ;;  %v2142_v50 = vadd.f32 %v2141_v58, %v1872_v53 }
 0x1cd   :  { %v1546_v7 = vpop.f32.mrf.mxu2  ;;  %v1696_v2 = vpop.f32.mrf.mxu3 }
 0x1ce   :  { %v1547_v33 = vadd.f32 %v3984_v38, %v1546_v7  ;;  %v1697_v39 = vadd.f32 %v3984_v38, %v1696_v2  ;;  %v1224_v9 = vpop.f32.mrf.mxu0  ;;  %v1389_v24 = vpop.f32.mrf.mxu1 }
 0x1cf   :  { %v1225_v32 = vadd.f32 %v3984_v38, %v1224_v9  ;;  %v1390_v58 = vadd.f32 %v3984_v38, %v1389_v24 }
 0x1d0   :  { %v1996_v46 = vmax.f32 %v1697_v39, 0.0  ;;  %v1936_v15 = vmax.f32 %v1547_v33, 0.0 }
 0x1d1   :  { %v1807_v14 = vmax.f32 %v1225_v32, 0.0  ;;  %v1873_v40 = vmax.f32 %v1390_v58, 0.0  ;;  %1263 = vmatmul.bf16.gmra.mxu0 %v3216_v16  ;;  %1428 = vmatmul.bf16.gmra.mxu1 %v3249_v22 }
 0x1d2   :  { %v2286_v29 = vadd.f32 %v2285_v4, %v1996_v46  ;;  %1588 = vmatmul.bf16.gmra.mxu2 %v3281_v25  ;;  %1738 = vmatmul.bf16.gmra.mxu3 %v3311_v34  ;;  %v2216_v2 = vadd.f32 %v2215_v41, %v1936_v15  ;;  %v3217_v46 = vld [vmem:[%s4439_s0 + $0xe0] sm:$0xff] }
 0x1d3   :  { %v2067_v54 = vadd.f32 %v2066_v0, %v1807_v14  ;;  %v2143_v8 = vadd.f32 %v2142_v50, %v1873_v40 }
 0x1d5   :  { %v1549_v53 = vpop.f32.mrf.mxu2  ;;  %v1699_v7 = vpop.f32.mrf.mxu3 }
 0x1d6   :  { %v1550_v17 = vadd.f32 %v3984_v38, %v1549_v53  ;;  %v1700_v9 = vadd.f32 %v3984_v38, %v1699_v7  ;;  %v1226_v60 = vpop.f32.mrf.mxu0  ;;  %v1391_v24 = vpop.f32.mrf.mxu1 }
 0x1d7   :  { %v1227_v39 = vadd.f32 %v3984_v38, %v1226_v60  ;;  %v1392_v16 = vadd.f32 %v3984_v38, %v1391_v24  ;;  %v3250_v60 = vld [vmem:[%s4439_s0 + $0x1e8] sm:$0xff] }
 0x1d8   :  { %v1937_v22 = vmax.f32 %v1550_v17, 0.0  ;;  %v1997_v33 = vmax.f32 %v1700_v9, 0.0 }
 0x1d9   :  { %v1808_v4 = vmax.f32 %v1227_v39, 0.0  ;;  %v1874_v25 = vmax.f32 %v1392_v16, 0.0 }
 0x1da   :  { %v2217_v34 = vadd.f32 %v2216_v2, %v1937_v22  ;;  %v2287_v0 = vadd.f32 %v2286_v29, %v1997_v33  ;;  %v3282_v29 = vld [vmem:[%s4439_s0 + $0x2e8] sm:$0xff] }
 0x1db   :  { %v2068_v50 = vadd.f32 %v2067_v54, %v1808_v4  ;;  %v2144_v32 = vadd.f32 %v2143_v8, %v1874_v25  ;;  %v3312_v54 = vld [vmem:[%s4439_s0 + $0x3d8] sm:$0xff] }
 0x1dc   :  { %v3328_v4 = vld [vmem:[%s4440_s3 + $0x18] sm:$0xff] }
 0x1dd   :  { %v1551_v58 = vpop.f32.mrf.mxu2  ;;  %v1701_v41 = vpop.f32.mrf.mxu3  ;;  %2465 = vmatpush.bf16.msrb.mxu1 %v3328_v4 }
 0x1de   :  { %v1552_v14 = vadd.f32 %v3984_v38, %v1551_v58  ;;  %v1702_v17 = vadd.f32 %v3984_v38, %v1701_v41  ;;  %v1229_v40 = vpop.f32.mrf.mxu0  ;;  %v1394_v15 = vpop.f32.mrf.mxu1 }
 0x1df   :  { %v1230_v8 = vadd.f32 %v3984_v38, %v1229_v40  ;;  %v1395_v53 = vadd.f32 %v3984_v38, %v1394_v15 }
 0x1e0   :  { %v1938_v7 = vmax.f32 %v1552_v14, 0.0  ;;  %v1998_v2 = vmax.f32 %v1702_v17, 0.0 }
 0x1e1   :  { %v1809_v9 = vmax.f32 %v1230_v8, 0.0  ;;  %v1875_v24 = vmax.f32 %v1395_v53, 0.0  ;;  %1268 = vmatmul.bf16.gmra.mxu0 %v3217_v46  ;;  %1433 = vmatmul.bf16.gmra.mxu1 %v3250_v60 }
 0x1e2   :  { %v2218_v39 = vadd.f32 %v2217_v34, %v1938_v7  ;;  %v2288_v16 = vadd.f32 %v2287_v0, %v1998_v2  ;;  %1593 = vmatmul.bf16.gmra.mxu2 %v3282_v29  ;;  %1743 = vmatmul.bf16.gmra.mxu3 %v3312_v54  ;;  %v3218_v7 = vld [vmem:[%s4439_s0 + $0xe8] sm:$0xff]  ;;  %v3251_v2 = vld [vmem:[%s4439_s0 + $0x1f0] sm:$0xff] }
 0x1e3   :  { %v2069_v22 = vadd.f32 %v2068_v50, %v1809_v9  ;;  %v2145_v33 = vadd.f32 %v2144_v32, %v1875_v24 }
 0x1e5   :  { %v1554_v25 = vpop.f32.mrf.mxu2  ;;  %v1704_v58 = vpop.f32.mrf.mxu3 }
 0x1e6   :  { %v1555_v41 = vadd.f32 %v3984_v38, %v1554_v25  ;;  %v1705_v14 = vadd.f32 %v3984_v38, %v1704_v58  ;;  %v1231_v17 = vpop.f32.mrf.mxu0  ;;  %v1396_v46 = vpop.f32.mrf.mxu1 }
 0x1e7   :  { %v1232_v34 = vadd.f32 %v3984_v38, %v1231_v17  ;;  %v1397_v50 = vadd.f32 %v3984_v38, %v1396_v46 }
 0x1e8   :  { %v1939_v0 = vmax.f32 %v1555_v41, 0.0  ;;  %v1999_v60 = vmax.f32 %v1705_v14, 0.0 }
 0x1e9   :  { %v1810_v40 = vmax.f32 %v1232_v34, 0.0  ;;  %v1876_v54 = vmax.f32 %v1397_v50, 0.0 }
 0x1ea   :  { %v2219_v32 = vadd.f32 %v2218_v39, %v1939_v0  ;;  %v2289_v15 = vadd.f32 %v2288_v16, %v1999_v60  ;;  %v3283_v39 = vld [vmem:[%s4439_s0 + $0x2f0] sm:$0xff]  ;;  %v3313_v16 = vld [vmem:[%s4439_s0 + $0x3e0] sm:$0xff] }
 0x1eb   :  { %v2070_v29 = vadd.f32 %v2069_v22, %v1810_v40  ;;  %v2146_v17 = vadd.f32 %v2145_v33, %v1876_v54 }
 0x1ed   :  { %v1556_v8 = vpop.f32.mrf.mxu2  ;;  %v1706_v53 = vpop.f32.mrf.mxu3 }
 0x1ee   :  { %v1557_v9 = vadd.f32 %v3984_v38, %v1556_v8  ;;  %v1707_v24 = vadd.f32 %v3984_v38, %v1706_v53  ;;  %v1234_v4 = vpop.f32.mrf.mxu0  ;;  %v1399_v25 = vpop.f32.mrf.mxu1 }
 0x1ef   :  { %v1235_v22 = vadd.f32 %v3984_v38, %v1234_v4  ;;  %v1400_v58 = vadd.f32 %v3984_v38, %v1399_v25 }
 0x1f0   :  { %v1940_v41 = vmax.f32 %v1557_v9, 0.0  ;;  %v2000_v14 = vmax.f32 %v1707_v24, 0.0 }
 0x1f1   :  { %v1811_v46 = vmax.f32 %v1235_v22, 0.0  ;;  %v1877_v34 = vmax.f32 %v1400_v58, 0.0  ;;  %1273 = vmatmul.bf16.gmra.mxu0 %v3218_v7  ;;  %1438 = vmatmul.bf16.gmra.mxu1 %v3251_v2 }
 0x1f2   :  { %v2220_v0 = vadd.f32 %v2219_v32, %v1940_v41  ;;  %v2290_v60 = vadd.f32 %v2289_v15, %v2000_v14  ;;  %1598 = vmatmul.bf16.gmra.mxu2 %v3283_v39  ;;  %1748 = vmatmul.bf16.gmra.mxu3 %v3313_v16  ;;  %v3219_v41 = vld [vmem:[%s4439_s0 + $0xf0] sm:$0xff]  ;;  %v3252_v14 = vld [vmem:[%s4439_s0 + $0x1f8] sm:$0xff] }
 0x1f3   :  { %v2071_v40 = vadd.f32 %v2070_v29, %v1811_v46  ;;  %v2147_v50 = vadd.f32 %v2146_v17, %v1877_v34 }
 0x1f5   :  { %v1559_v8 = vpop.f32.mrf.mxu2  ;;  %v1709_v53 = vpop.f32.mrf.mxu3 }
 0x1f6   :  { %v1560_v21 = vadd.f32 %v3984_v38, %v1559_v8  ;;  %v1710_v4 = vadd.f32 %v3984_v38, %v1709_v53  ;;  %v1236_v25 = vpop.f32.mrf.mxu0  ;;  %v1401_v9 = vpop.f32.mrf.mxu1 }
 0x1f7   :  { %v1237_v33 = vadd.f32 %v3984_v38, %v1236_v25  ;;  %v1402_v54 = vadd.f32 %v3984_v38, %v1401_v9 }
 0x1f8   :  { %v1941_v7 = vmax.f32 %v1560_v21, 0.0  ;;  %v2001_v2 = vmax.f32 %v1710_v4, 0.0 }
 0x1f9   :  { %v1812_v32 = vmax.f32 %v1237_v33, 0.0  ;;  %v1878_v15 = vmax.f32 %v1402_v54, 0.0 }
 0x1fa   :  { %v2221_v24 = vadd.f32 %v2220_v0, %v1941_v7  ;;  %v2291_v39 = vadd.f32 %v2290_v60, %v2001_v2  ;;  %v3314_v0 = vld [vmem:[%s4439_s0 + $0x3e8] sm:$0xff] }
 0x1fb   :  { %v2072_v29 = vadd.f32 %v2071_v40, %v1812_v32  ;;  %v2148_v16 = vadd.f32 %v2147_v50, %v1878_v15  ;;  %v3338_v7 = vld [vmem:[%s4441_s5 + $0x28] sm:$0xff] }
 0x1fc   :  { %2546 = vmatpush.bf16.msrb.mxu2 %v3338_v7 }
 0x1fd   :  { %v1561_v22 = vpop.f32.mrf.mxu2  ;;  %v1711_v58 = vpop.f32.mrf.mxu3 }
 0x1fe   :  { %v1562_v17 = vadd.f32 %v3984_v38, %v1561_v22  ;;  %v1712_v21 = vadd.f32 %v3984_v38, %v1711_v58  ;;  %v1239_v46 = vpop.f32.mrf.mxu0  ;;  %v1404_v34 = vpop.f32.mrf.mxu1 }
 0x1ff   :  { %v1240_v60 = vadd.f32 %v3984_v38, %v1239_v46  ;;  %v1405_v40 = vadd.f32 %v3984_v38, %v1404_v34 }
 0x200   :  { %v1942_v50 = vmax.f32 %v1562_v17, 0.0  ;;  %v2002_v8 = vmax.f32 %v1712_v21, 0.0 }
 0x201   :  { %v1813_v53 = vmax.f32 %v1240_v60, 0.0  ;;  %v1879_v4 = vmax.f32 %v1405_v40, 0.0  ;;  %1278 = vmatmul.bf16.gmra.mxu0 %v3219_v41  ;;  %1443 = vmatmul.bf16.gmra.mxu1 %v3252_v14 }
 0x202   :  { %v2222_v25 = vadd.f32 %v2221_v24, %v1942_v50  ;;  %v2292_v9 = vadd.f32 %v2291_v39, %v2002_v8  ;;  %1753 = vmatmul.bf16.gmra.mxu3 %v3314_v0  ;;  %v3220_v50 = vld [vmem:[%s4439_s0 + $0xf8] sm:$0xff]  ;;  %v3253_v8 = vld [vmem:[%s4439_s0 + $0x200] sm:$0xff] }
 0x203   :  { %v2073_v33 = vadd.f32 %v2072_v29, %v1813_v53  ;;  %v2149_v54 = vadd.f32 %v2148_v16, %v1879_v4 }
 0x205   :  { %v1564_v2 = vpop.f32.mrf.mxu2  ;;  %v1714_v32 = vpop.f32.mrf.mxu3 }
 0x206   :  { %v1565_v15 = vadd.f32 %v3984_v38, %v1564_v2  ;;  %v1715_v22 = vadd.f32 %v3984_v38, %v1714_v32  ;;  %v1241_v58 = vpop.f32.mrf.mxu0  ;;  %v1406_v17 = vpop.f32.mrf.mxu1 }
 0x207   :  { %v1242_v41 = vadd.f32 %v3984_v38, %v1241_v58  ;;  %v1407_v24 = vadd.f32 %v3984_v38, %v1406_v17 }
 0x208   :  { %v1943_v39 = vmax.f32 %v1565_v15, 0.0  ;;  %v2003_v29 = vmax.f32 %v1715_v22, 0.0 }
 0x209   :  { %v1814_v16 = vmax.f32 %v1242_v41, 0.0  ;;  %v1880_v14 = vmax.f32 %v1407_v24, 0.0 }
 0x20a   :  { %v2223_v21 = vadd.f32 %v2222_v25, %v1943_v39  ;;  %v2293_v46 = vadd.f32 %v2292_v9, %v2003_v29  ;;  %v3315_v25 = vld [vmem:[%s4439_s0 + $0x3f0] sm:$0xff] }
 0x20b   :  { %v2074_v34 = vadd.f32 %v2073_v33, %v1814_v16  ;;  %v2150_v0 = vadd.f32 %v2149_v54, %v1880_v14 }
 0x20d   :  { %v1566_v60 = vpop.f32.mrf.mxu2  ;;  %v1716_v40 = vpop.f32.mrf.mxu3 }
 0x20e   :  { %v1567_v53 = vadd.f32 %v3984_v38, %v1566_v60  ;;  %v1717_v4 = vadd.f32 %v3984_v38, %v1716_v40  ;;  %v1244_v7 = vpop.f32.mrf.mxu0  ;;  %v1409_v2 = vpop.f32.mrf.mxu1 }
 0x20f   :  { %v1245_v9 = vadd.f32 %v3984_v38, %v1244_v7  ;;  %v1410_v33 = vadd.f32 %v3984_v38, %v1409_v2 }
 0x210   :  { %v1944_v54 = vmax.f32 %v1567_v53, 0.0  ;;  %v2004_v32 = vmax.f32 %v1717_v4, 0.0 }
 0x211   :  { %v1815_v15 = vmax.f32 %v1245_v9, 0.0  ;;  %v1881_v22 = vmax.f32 %v1410_v33, 0.0  ;;  %1283 = vmatmul.bf16.gmra.mxu0 %v3220_v50  ;;  %1448 = vmatmul.bf16.gmra.mxu1 %v3253_v8  ;;  %v3221_v33 = vld [vmem:[%s4439_s0 + $0x100] sm:$0xff] }
 0x212   :  { %v2224_v58 = vadd.f32 %v2223_v21, %v1944_v54  ;;  %v2294_v17 = vadd.f32 %v2293_v46, %v2004_v32  ;;  %1758 = vmatmul.bf16.gmra.mxu3 %v3315_v25 }
 0x213   :  { %v2075_v41 = vadd.f32 %v2074_v34, %v1815_v15  ;;  %v2151_v24 = vadd.f32 %v2150_v0, %v1881_v22 }
 0x215   :  { %v1569_v39 = vpop.f32.mrf.mxu2  ;;  %v1719_v29 = vpop.f32.mrf.mxu3 }
 0x216   :  { %v1570_v16 = vadd.f32 %v3984_v38, %v1569_v39  ;;  %v1720_v14 = vadd.f32 %v3984_v38, %v1719_v29  ;;  %v1246_v60 = vpop.f32.mrf.mxu0  ;;  %v1411_v40 = vpop.f32.mrf.mxu1  ;;  %v3316_v39 = vld [vmem:[%s4439_s0 + $0x3f8] sm:$0xff] }
 0x217   :  { %v1247_v53 = vadd.f32 %v3984_v38, %v1246_v60  ;;  %v1412_v4 = vadd.f32 %v3984_v38, %v1411_v40 }
 0x218   :  { %v1945_v7 = vmax.f32 %v1570_v16, 0.0  ;;  %v2005_v50 = vmax.f32 %v1720_v14, 0.0 }
 0x219   :  { %v1816_v8 = vmax.f32 %v1247_v53, 0.0  ;;  %v1882_v21 = vmax.f32 %v1412_v4, 0.0  ;;  %v3327_v4 = vld [vmem:[%s4440_s3 + $0x10] sm:$0xff] }
 0x21a   :  { %v2225_v46 = vadd.f32 %v2224_v58, %v1945_v7  ;;  %v2295_v2 = vadd.f32 %v2294_v17, %v2005_v50  ;;  %2466 = vmatpush.bf16.msrb.mxu1 %v3327_v4 }
 0x21b   :  { %v2076_v34 = vadd.f32 %v2075_v41, %v1816_v8  ;;  %v2152_v0 = vadd.f32 %v2151_v24, %v1882_v21 }
 0x21d   :  { %v1571_v25 = vpop.f32.mrf.mxu2  ;;  %v1721_v9 = vpop.f32.mrf.mxu3 }
 0x21e   :  { %v1572_v54 = vadd.f32 %v3984_v38, %v1571_v25  ;;  %v1722_v32 = vadd.f32 %v3984_v38, %v1721_v9  ;;  %v1249_v15 = vpop.f32.mrf.mxu0  ;;  %v1414_v22 = vpop.f32.mrf.mxu1 }
 0x21f   :  { %v1250_v58 = vadd.f32 %v3984_v38, %v1249_v15  ;;  %v1415_v17 = vadd.f32 %v3984_v38, %v1414_v22 }
 0x220   :  { %v1946_v41 = vmax.f32 %v1572_v54, 0.0  ;;  %v2006_v24 = vmax.f32 %v1722_v32, 0.0 }
 0x221   :  { %v1817_v29 = vmax.f32 %v1250_v58, 0.0  ;;  %v1883_v16 = vmax.f32 %v1415_v17, 0.0  ;;  %1288 = vmatmul.bf16.gmra.mxu0 %v3221_v33 }
 0x222   :  { %v2226_v14 = vadd.f32 %v2225_v46, %v1946_v41  ;;  %v2296_v60 = vadd.f32 %v2295_v2, %v2006_v24  ;;  %1763 = vmatmul.bf16.gmra.mxu3 %v3316_v39 }
 0x223   :  { %v2077_v40 = vadd.f32 %v2076_v34, %v1817_v29  ;;  %v2153_v53 = vadd.f32 %v2152_v0, %v1883_v16 }
 0x225   :  { %v1574_v7 = vpop.f32.mrf.mxu2  ;;  %v1724_v50 = vpop.f32.mrf.mxu3 }
 0x226   :  { %v1575_v8 = vadd.f32 %v3984_v38, %v1574_v7  ;;  %v1725_v21 = vadd.f32 %v3984_v38, %v1724_v50  ;;  %v1251_v25 = vpop.f32.mrf.mxu0  ;;  %v1416_v9 = vpop.f32.mrf.mxu1 }
 0x227   :  { %v1252_v33 = vadd.f32 %v3984_v38, %v1251_v25  ;;  %v1417_v46 = vadd.f32 %v3984_v38, %v1416_v9 }
 0x228   :  { %v1947_v2 = vmax.f32 %v1575_v8, 0.0  ;;  %v2007_v34 = vmax.f32 %v1725_v21, 0.0 }
 0x229   :  { %v1818_v0 = vmax.f32 %v1252_v33, 0.0  ;;  %v1884_v54 = vmax.f32 %v1417_v46, 0.0 }
 0x22a   :  { %v4130_v32 = vadd.f32 %v2226_v14, %v1947_v2  ;;  %v2297_v15 = vadd.f32 %v2296_v60, %v2007_v34 }
 0x22b   :  { %v2078_v22 = vadd.f32 %v2077_v40, %v1818_v0  ;;  %v2154_v39 = vadd.f32 %v2153_v53, %v1884_v54 }
 0x22d   :  { %v4132_v58 = vpop.f32.mrf.mxu2  ;;  %v1726_v17 = vpop.f32.mrf.mxu3 }
 0x22e   :  { %v1727_v41 = vadd.f32 %v3984_v38, %v1726_v17  ;;  %v1254_v24 = vpop.f32.mrf.mxu0  ;;  %v1419_v29 = vpop.f32.mrf.mxu1 }
 0x22f   :  { %v1255_v16 = vadd.f32 %v3984_v38, %v1254_v24  ;;  %v1420_v4 = vadd.f32 %v3984_v38, %v1419_v29 }
 0x230   :  { %v2008_v7 = vmax.f32 %v1727_v41, 0.0 }
 0x231   :  { %v1819_v50 = vmax.f32 %v1255_v16, 0.0  ;;  %v1885_v8 = vmax.f32 %v1420_v4, 0.0 }
 0x232   :  { %v2298_v21 = vadd.f32 %v2297_v15, %v2008_v7  ;;  %v3337_v15 = vld [vmem:[%s4441_s5 + $0x20] sm:$0xff] }
 0x233   :  { %v2079_v14 = vadd.f32 %v2078_v22, %v1819_v50  ;;  %v2155_v25 = vadd.f32 %v2154_v39, %v1885_v8  ;;  %2547 = vmatpush.bf16.msrb.mxu2 %v3337_v15 }
 0x235   :  { %v4137_v60 = vpop.f32.mrf.mxu2  ;;  %v1729_v40 = vpop.f32.mrf.mxu3 }
 0x236   :  { %v1730_v53 = vadd.f32 %v3984_v38, %v1729_v40  ;;  %v1256_v9 = vpop.f32.mrf.mxu0  ;;  %v1421_v33 = vpop.f32.mrf.mxu1 }
 0x237   :  { %v1257_v46 = vadd.f32 %v3984_v38, %v1256_v9  ;;  %v1422_v2 = vadd.f32 %v3984_v38, %v1421_v33 }
 0x238   :  { %v2009_v34 = vmax.f32 %v1730_v53, 0.0 }
 0x239   :  { %v1820_v0 = vmax.f32 %v1257_v46, 0.0  ;;  %v1886_v54 = vmax.f32 %v1422_v2, 0.0 }
 0x23a   :  { %v2299_v17 = vadd.f32 %v2298_v21, %v2009_v34 }
 0x23b   :  { %v2080_v41 = vadd.f32 %v2079_v14, %v1820_v0  ;;  %v2156_v24 = vadd.f32 %v2155_v25, %v1886_v54 }
 0x23d   :  { %v4145_v22 = vpop.f32.mrf.mxu2  ;;  %v1731_v39 = vpop.f32.mrf.mxu3 }
 0x23e   :  { %v1732_v29 = vadd.f32 %v3984_v38, %v1731_v39  ;;  %v1259_v16 = vpop.f32.mrf.mxu0  ;;  %v1424_v4 = vpop.f32.mrf.mxu1 }
 0x23f   :  { %v1260_v7 = vadd.f32 %v3984_v38, %v1259_v16  ;;  %v1425_v50 = vadd.f32 %v3984_v38, %v1424_v4 }
 0x240   :  { %v2010_v8 = vmax.f32 %v1732_v29, 0.0 }
 0x241   :  { %v1821_v21 = vmax.f32 %v1260_v7, 0.0  ;;  %v1887_v14 = vmax.f32 %v1425_v50, 0.0 }
 0x242   :  { %v2300_v25 = vadd.f32 %v2299_v17, %v2010_v8 }
 0x243   :  { %v2081_v40 = vadd.f32 %v2080_v41, %v1821_v21  ;;  %v2157_v53 = vadd.f32 %v2156_v24, %v1887_v14 }
 0x245   :  { %v4150_v9 = vpop.f32.mrf.mxu2  ;;  %v1734_v33 = vpop.f32.mrf.mxu3 }
 0x246   :  { %v1735_v46 = vadd.f32 %v3984_v38, %v1734_v33  ;;  %v1261_v2 = vpop.f32.mrf.mxu0  ;;  %v1426_v34 = vpop.f32.mrf.mxu1 }
 0x247   :  { %v1262_v0 = vadd.f32 %v3984_v38, %v1261_v2  ;;  %v1427_v54 = vadd.f32 %v3984_v38, %v1426_v34 }
 0x248   :  { %v2011_v15 = vmax.f32 %v1735_v46, 0.0 }
 0x249   :  { %v1822_v39 = vmax.f32 %v1262_v0, 0.0  ;;  %v1888_v16 = vmax.f32 %v1427_v54, 0.0 }
 0x24a   :  { %v2301_v29 = vadd.f32 %v2300_v25, %v2011_v15 }
 0x24b   :  { %v2082_v4 = vadd.f32 %v2081_v40, %v1822_v39  ;;  %v2158_v7 = vadd.f32 %v2157_v53, %v1888_v16 }
 0x24d   :  { %v1586_v17 = vpop.f32.mrf.mxu2  ;;  %v1736_v41 = vpop.f32.mrf.mxu3 }
 0x24e   :  { %v1737_v24 = vadd.f32 %v3984_v38, %v1736_v41  ;;  %v1264_v50 = vpop.f32.mrf.mxu0  ;;  %v1429_v8 = vpop.f32.mrf.mxu1 }
 0x24f   :  { %v1265_v21 = vadd.f32 %v3984_v38, %v1264_v50  ;;  %v1430_v14 = vadd.f32 %v3984_v38, %v1429_v8 }
 0x250   :  { %v2012_v33 = vmax.f32 %v1737_v24, 0.0 }
 0x251   :  { %v1823_v2 = vmax.f32 %v1265_v21, 0.0  ;;  %v1889_v37 = vmax.f32 %v1430_v14, 0.0 }
 0x252   :  { %v2302_v34 = vadd.f32 %v2301_v29, %v2012_v33 }
 0x253   :  { %v2083_v46 = vadd.f32 %v2082_v4, %v1823_v2  ;;  %v2159_v0 = vadd.f32 %v2158_v7, %v1889_v37 }
 0x255   :  { %v1589_v54 = vpop.f32.mrf.mxu2  ;;  %v1739_v25 = vpop.f32.mrf.mxu3 }
 0x256   :  { %v1740_v40 = vadd.f32 %v3984_v38, %v1739_v25  ;;  %v1266_v53 = vpop.f32.mrf.mxu0  ;;  %v1431_v15 = vpop.f32.mrf.mxu1 }
 0x257   :  { %v1267_v39 = vadd.f32 %v3984_v38, %v1266_v53  ;;  %v1432_v16 = vadd.f32 %v3984_v38, %v1431_v15 }
 0x258   :  { %v2013_v41 = vmax.f32 %v1740_v40, 0.0  ;;  %v1577_v40 = vadd.f32 %v3984_v38, %v4132_v58 }
 0x259   :  { %v1824_v50 = vmax.f32 %v1267_v39, 0.0  ;;  %v1890_v52 = vmax.f32 %v1432_v16, 0.0 }
 0x25a   :  { %v4161_v8 = vadd.f32 %v2302_v34, %v2013_v41  ;;  %v1948_v41 = vmax.f32 %v1577_v40, 0.0 }
 0x25b   :  { %v2084_v24 = vadd.f32 %v2083_v46, %v1824_v50  ;;  %v2160_v21 = vadd.f32 %v2159_v0, %v1890_v52  ;;  %v1580_v0 = vadd.f32 %v3984_v38, %v4137_v60  ;;  %v1582_v50 = vadd.f32 %v3984_v38, %v4145_v22 }
 0x25c   :  { %4478 = vst [vmem:[#allocation33_spill] sm:$0xff] %v4161_v8  ;;  %v1587_v60 = vadd.f32 %v3984_v38, %v1586_v17 }
 0x25d   :  { %v1591_v29 = vpop.f32.mrf.mxu2  ;;  %v1949_v58 = vmax.f32 %v1580_v0, 0.0 }
 0x25e   :  { %v1269_v4 = vpop.f32.mrf.mxu0  ;;  %v1434_v37 = vpop.f32.mrf.mxu1 }
 0x25f   :  { %v1270_v7 = vadd.f32 %v3984_v38, %v1269_v4  ;;  %v1435_v14 = vadd.f32 %v3984_v38, %v1434_v37  ;;  %v1585_v37 = vadd.f32 %v3984_v38, %v4150_v9  ;;  %v1952_v9 = vmax.f32 %v1587_v60, 0.0 }
 0x261   :  { %v1825_v33 = vmax.f32 %v1270_v7, 0.0  ;;  %v1891_v2 = vmax.f32 %v1435_v14, 0.0  ;;  %v2228_v14 = vadd.f32 %v4130_v32, %v1948_v41 }
 0x263   :  { %v2085_v25 = vadd.f32 %v2084_v24, %v1825_v33  ;;  %v2161_v53 = vadd.f32 %v2160_v21, %v1891_v2  ;;  %v4173_v24 = vpop.f32.mrf.mxu3  ;;  %v1950_v33 = vmax.f32 %v1582_v50, 0.0 }
 0x265   :  { %v1594_v19 = vpop.f32.mrf.mxu2 }
 0x266   :  { %v1271_v15 = vpop.f32.mrf.mxu0  ;;  %v1436_v34 = vpop.f32.mrf.mxu1  ;;  %v1595_v50 = vadd.f32 %v3984_v38, %v1594_v19 }
 0x267   :  { %v1272_v46 = vadd.f32 %v3984_v38, %v1271_v15  ;;  %v1437_v52 = vadd.f32 %v3984_v38, %v1436_v34  ;;  %v2229_v34 = vadd.f32 %v2228_v14, %v1949_v58 }
 0x268   :  { %v1955_v60 = vmax.f32 %v1595_v50, 0.0 }
 0x269   :  { %v1826_v39 = vmax.f32 %v1272_v46, 0.0  ;;  %v1892_v16 = vmax.f32 %v1437_v52, 0.0  ;;  %v1951_v46 = vmax.f32 %v1585_v37, 0.0  ;;  %v2230_v0 = vadd.f32 %v2229_v34, %v1950_v33  ;;  %v3326_v33 = vld [vmem:[%s4440_s3 + $0x8] sm:$0xff] }
 0x26a   :  { %2467 = vmatpush.bf16.msrb.mxu1 %v3326_v33 }
 0x26b   :  { %v2086_v21 = vadd.f32 %v2085_v25, %v1826_v39  ;;  %v2162_v4 = vadd.f32 %v2161_v53, %v1892_v16  ;;  %v1590_v25 = vadd.f32 %v3984_v38, %v1589_v54  ;;  %v1592_v39 = vadd.f32 %v3984_v38, %v1591_v29  ;;  %v4184_v8 = vpop.f32.mrf.mxu3 }
 0x26c   :  { %v2231_v41 = vadd.f32 %v2230_v0, %v1951_v46 }
 0x26d   :  { %v1596_v7 = vpop.f32.mrf.mxu2  ;;  %v1953_v17 = vmax.f32 %v1590_v25, 0.0  ;;  %v1954_v58 = vmax.f32 %v1592_v39, 0.0 }
 0x26e   :  { %v1274_v2 = vpop.f32.mrf.mxu0  ;;  %v1439_v15 = vpop.f32.mrf.mxu1  ;;  %v1597_v37 = vadd.f32 %v3984_v38, %v1596_v7 }
 0x26f   :  { %v1275_v40 = vadd.f32 %v3984_v38, %v1274_v2  ;;  %v1440_v22 = vadd.f32 %v3984_v38, %v1439_v15  ;;  %v2232_v15 = vadd.f32 %v2231_v41, %v1952_v9  ;;  %v1605_v9 = vadd.f32 %v3984_v38, %v3563_v49 }
 0x270   :  { %v1956_v46 = vmax.f32 %v1597_v37, 0.0 }
 0x271   :  { %v1827_v53 = vmax.f32 %v1275_v40, 0.0  ;;  %v1893_v52 = vmax.f32 %v1440_v22, 0.0  ;;  %v1959_v33 = vmax.f32 %v1605_v9, 0.0 }
 0x273   :  { %v2087_v32 = vadd.f32 %v2086_v21, %v1827_v53  ;;  %v2163_v16 = vadd.f32 %v2162_v4, %v1893_v52  ;;  %v2233_v4 = vadd.f32 %v2232_v15, %v1953_v17  ;;  %v4196_v15 = vpop.f32.mrf.mxu3 }
 0x275   :  { %v1599_v2 = vpop.f32.mrf.mxu2  ;;  %v2234_v34 = vadd.f32 %v2233_v4, %v1954_v58 }
 0x276   :  { %v1276_v54 = vpop.f32.mrf.mxu0  ;;  %v1441_v14 = vpop.f32.mrf.mxu1  ;;  %v1600_v19 = vadd.f32 %v3984_v38, %v1599_v2 }
 0x277   :  { %v1277_v29 = vadd.f32 %v3984_v38, %v1276_v54  ;;  %v1442_v21 = vadd.f32 %v3984_v38, %v1441_v14  ;;  %v2235_v53 = vadd.f32 %v2234_v34, %v1955_v60 }
 0x278   :  { %v1957_v52 = vmax.f32 %v1600_v19, 0.0 }
 0x279   :  { %v1828_v40 = vmax.f32 %v1277_v29, 0.0  ;;  %v1894_v22 = vmax.f32 %v1442_v21, 0.0  ;;  %v2236_v39 = vadd.f32 %v2235_v53, %v1956_v46  ;;  %v3375_v53 = vmov 256.0  }
 0x27a   :  { %3369 = vrcp.f32 %v3375_v53 }
 0x27b   :  { %v2088_v7 = vadd.f32 %v2087_v32, %v1828_v40  ;;  %v2164_v25 = vadd.f32 %v2163_v16, %v1894_v22  ;;  %v1607_v32 = vadd.f32 %v3984_v38, %v3570_v57  ;;  %v2237_v16 = vadd.f32 %v2236_v39, %v1957_v52  ;;  %v4206_v57 = vpop.f32.mrf.mxu3 }
 0x27d   :  { %v1601_v0 = vpop.f32.mrf.mxu2  ;;  %v1960_v4 = vmax.f32 %v1607_v32, 0.0 }
 0x27e   :  { %v1602_v41 = vadd.f32 %v3984_v38, %v1601_v0  ;;  %v1279_v17 = vpop.f32.mrf.mxu0  ;;  %v1444_v50 = vpop.f32.mrf.mxu1 }
 0x27f   :  { %v1280_v2 = vadd.f32 %v3984_v38, %v1279_v17  ;;  %v1445_v58 = vadd.f32 %v3984_v38, %v1444_v50 }
 0x280   :  { %v1958_v37 = vmax.f32 %v1602_v41, 0.0 }
 0x281   :  { %v1829_v54 = vmax.f32 %v1280_v2, 0.0  ;;  %v1895_v14 = vmax.f32 %v1445_v58, 0.0 }
 0x282   :  { %v2238_v49 = vadd.f32 %v2237_v16, %v1958_v37 }
 0x283   :  { %v2089_v29 = vadd.f32 %v2088_v7, %v1829_v54  ;;  %v2165_v21 = vadd.f32 %v2164_v25, %v1895_v14  ;;  %v2056_v7 = vrot.slane %v3938_v45, 4  ;;  %v3370_v25 = vpop.eup %3369  ;;  %v4213_v16 = vpop.f32.mrf.mxu3 }
 0x284   :  { %v2239_v60 = vadd.f32 %v2238_v49, %v1959_v33  ;;  %v2322_v58 = vmul.f32 256.0, %v3370_v25  ;;  %vm2326_vm0 = vweird.f32 %v3370_v25 }
 0x285   :  { %v2057_v2 = vadd.f32 %v2056_v7, %v3938_v45 }
 0x286   :  { %v4202_v19 = vadd.f32 %v2239_v60, %v1960_v4  ;;  %v1281_v40 = vpop.f32.mrf.mxu0  ;;  %v1446_v22 = vpop.f32.mrf.mxu1  ;;  %v2323_v33 = vsub.f32 1.0, %v2322_v58 }
 0x287   :  { %v1282_v34 = vadd.f32 %v3984_v38, %v1281_v40  ;;  %v1447_v46 = vadd.f32 %v3984_v38, %v1446_v22  ;;  %v2058_v14 = vrot.slane %v2057_v2, 2  ;;  %v1457_v22 = vadd.f32 %v3984_v38, %v3568_v56 }
 0x289   :  { %v1830_v52 = vmax.f32 %v1282_v34, 0.0  ;;  %v1896_v0 = vmax.f32 %v1447_v46, 0.0  ;;  %v2059_v45 = vadd.f32 %v2058_v14, %v2057_v2  ;;  %v2324_v34 = vmul.f32 %v3370_v25, %v2323_v33  ;;  %v4231_v14 = vld [vmem:[%s4438_s2] ss:$0 sm:$0xff] }
 0x28b   :  { %v2090_v9 = vadd.f32 %v2089_v29, %v1830_v52  ;;  %v4208_v39 = vadd.f32 %v2165_v21, %v1896_v0  ;;  %v1455_v21 = vadd.f32 %v3984_v38, %v3561_v48  ;;  %v1460_v0 = vadd.f32 %v3984_v38, %v3587_v3  ;;  %v4226_v58 = vpop.f32.mrf.mxu3 }
 0x28c   :  { %v1462_v48 = vadd.f32 %v3984_v38, %v3593_v11  ;;  %v1465_v3 = vadd.f32 %v4231_v14, %v3611_v26  ;;  %v1472_v26 = vadd.f32 %v4231_v14, %v3641_v5  ;;  %v1475_v5 = vadd.f32 %v4231_v14, %v3662_v23 }
 0x28d   :  { %v1899_v52 = vmax.f32 %v1455_v21, 0.0 }
 0x28e   :  { %v1284_v41 = vpop.f32.mrf.mxu0  ;;  %v1449_v17 = vpop.f32.mrf.mxu1 }
 0x28f   :  { %v1285_v50 = vadd.f32 %v3984_v38, %v1284_v41  ;;  %v1450_v54 = vadd.f32 %v3984_v38, %v1449_v17  ;;  %v2060_v41 = vrot.slane %v2059_v45, 1  ;;  %v1900_v17 = vmax.f32 %v1457_v22, 0.0 }
 0x291   :  { %v1831_v32 = vmax.f32 %v1285_v50, 0.0  ;;  %v1897_v4 = vmax.f32 %v1450_v54, 0.0  ;;  %v2325_v50 = vadd.f32 %v3370_v25, %v2324_v34  ;;  %v1901_v54 = vmax.f32 %v1460_v0, 0.0 }
 0x292   :  { %v2061_v33 = vadd.f32 %v2060_v41, %v2059_v45  ;;  %v1295_v0 = vadd.f32 %v4231_v14, %v3547_v43 }
 0x293   :  { %v2091_v37 = vadd.f32 %v2090_v9, %v1831_v32 }
 0x296   :  { %v1286_v49 = vpop.f32.mrf.mxu0  ;;  %v1451_v29 = vpop.f32.mrf.mxu1 }
 0x297   :  { %v1287_v60 = vadd.f32 %v3984_v38, %v1286_v49  ;;  %v1452_v40 = vadd.f32 %v3984_v38, %v1451_v29  ;;  %v1902_v38 = vmax.f32 %v1462_v48, 0.0  ;;  %v1467_v49 = vadd.f32 %v4231_v14, %v3617_v36  ;;  %v3336_v36 = vld [vmem:[%s4441_s5 + $0x18] sm:$0xff]  ;;  %v4254_v48 = vpop.f32.mrf.mxu3 }
 0x298   :  { %v4237_v29 = vsel %vm2326_vm0, %v3370_v25, %v2325_v50  ;;  %2548 = vmatpush.bf16.msrb.mxu2 %v3336_v36 }
 0x299   :  { %v1832_v46 = vmax.f32 %v1287_v60, 0.0  ;;  %v1898_v53 = vmax.f32 %v1452_v40, 0.0  ;;  %v1903_v60 = vmax.f32 %v1465_v3, 0.0  ;;  %v1470_v40 = vadd.f32 %v4231_v14, %v3635_v55 }
 0x29a   :  { %v1297_v55 = vadd.f32 %v4231_v14, %v3565_v51  ;;  %v1835_v3 = vmax.f32 %v1295_v0, 0.0 }
 0x29b   :  { %v2092_v9 = vadd.f32 %v2091_v37, %v1832_v46  ;;  %v2173_v7 = vadd.f32 %v1898_v53, %v1897_v4  ;;  %v2328_v46 = vmul.f32 %v4237_v29, %v2061_v33  ;;  %v1904_v53 = vmax.f32 %v1467_v49, 0.0 }
 0x29d   :  { %v2093_v2 = vrot.slane %v2092_v9, 4  ;;  %v2174_v32 = vadd.f32 %v2173_v7, %v1899_v52  ;;  %v1905_v7 = vmax.f32 %v1470_v40, 0.0  ;;  %v2360_v43 = vpack.c.bf16 %v2328_v46, %v2328_v46 }
 0x29e   :  { %v1289_v56 = vpop.f32.mrf.mxu0 }
 0x29f   :  { %v2094_v37 = vadd.f32 %v2093_v2, %v2092_v9  ;;  %v2175_v11 = vadd.f32 %v2174_v32, %v1900_v17  ;;  %v1290_v25 = vadd.f32 %v4231_v14, %v1289_v56  ;;  %v1906_v2 = vmax.f32 %v1472_v26, 0.0 }
 0x2a0   :  { %v1477_v32 = vadd.f32 %v4231_v14, %v3668_v35 }
 0x2a1   :  { %v2095_v21 = vrot.slane %v2094_v37, 2  ;;  %v2176_v4 = vadd.f32 %v2175_v11, %v1901_v54  ;;  %v1833_v54 = vmax.f32 %v1290_v25, 0.0  ;;  %v1907_v11 = vmax.f32 %v1475_v5, 0.0 }
 0x2a2   :  { %v1908_v40 = vmax.f32 %v1477_v32, 0.0  ;;  %v1487_v5 = vadd.f32 %v4231_v14, %v3716_v47  ;;  %v1492_v47 = vadd.f32 %v4231_v14, %v3740_v27  ;;  %v3335_v27 = vld [vmem:[%s4441_s5 + $0x10] sm:$0xff] }
 0x2a3   :  { %v2096_v22 = vadd.f32 %v2095_v21, %v2094_v37  ;;  %v2177_v34 = vadd.f32 %v2176_v4, %v1902_v38  ;;  %v1300_v37 = vadd.f32 %v4231_v14, %v3578_v61  ;;  %v1480_v38 = vadd.f32 %v4231_v14, %v3686_v59  ;;  %2549 = vmatpush.bf16.msrb.mxu2 %v3335_v27 }
 0x2a4   :  { %v1836_v4 = vmax.f32 %v1297_v55, 0.0  ;;  %v1305_v59 = vadd.f32 %v4231_v14, %v3602_v18 }
 0x2a5   :  { %v2097_v45 = vrot.slane %v2096_v22, 1  ;;  %v2178_v52 = vadd.f32 %v2177_v34, %v1903_v60  ;;  %v1302_v60 = vadd.f32 %v4231_v14, %v3589_v6  ;;  %v2396_v34 = vunpack.c.l.b16 %v2360_v43 }
 0x2a6   :  { %v1291_v9 = vpop.f32.mrf.mxu0 }
 0x2a7   :  { %v2098_v41 = vadd.f32 %v2097_v45, %v2096_v22  ;;  %v2179_v17 = vadd.f32 %v2178_v52, %v1904_v53  ;;  %v1292_v50 = vadd.f32 %v4231_v14, %v1291_v9  ;;  %v1482_v22 = vadd.f32 %v4231_v14, %v3692_v10  ;;  %v4282_v9 = vpop.f32.mrf.mxu3 }
 0x2a8   :  { %v1837_v45 = vmax.f32 %v1300_v37, 0.0  ;;  %v1485_v52 = vadd.f32 %v4231_v14, %v3710_v31  ;;  %v1838_v0 = vmax.f32 %v1302_v60, 0.0  ;;  %v1307_v10 = vadd.f32 %v4231_v14, %v3614_v30 }
 0x2a9   :  { %v2329_v51 = vmul.f32 %v4237_v29, %v2098_v41  ;;  %v2180_v56 = vadd.f32 %v2179_v17, %v1905_v7  ;;  %v1834_v23 = vmax.f32 %v1292_v50, 0.0  ;;  %v1910_v55 = vmax.f32 %v1482_v22, 0.0  ;;  %v4479_v22 = vld [vmem:[#allocation2_spill] sm:$0xff] }
 0x2aa   :  { %v1839_v41 = vmax.f32 %v1305_v59, 0.0  ;;  %v1310_v31 = vadd.f32 %v4231_v14, %v3626_v42  ;;  %v1911_v17 = vmax.f32 %v1485_v52, 0.0  ;;  %v1490_v50 = vadd.f32 %v4231_v14, %v3734_v12 }
 0x2ab   :  { %v4265_v33 = vsel %vm2344_vm1, %v2329_v51, %v2328_v46  ;;  %v2361_v49 = vpack.c.bf16 %v2329_v51, %v2329_v51  ;;  %v2181_v35 = vadd.f32 %v2180_v56, %v1906_v2  ;;  %v2099_v21 = vadd.f32 %v1834_v23, %v1833_v54 }
 0x2ac   :  { %v1909_v46 = vmax.f32 %v1480_v38, 0.0  ;;  %v1840_v43 = vmax.f32 %v1307_v10, 0.0  ;;  %v1312_v30 = vadd.f32 %v4231_v14, %v3638_v62  ;;  %v1912_v51 = vmax.f32 %v1487_v5, 0.0  ;;  %v3325_v62 = vld [vmem:[%s4440_s3] sm:$0xff] }
 0x2ad   :  { %v2397_v61 = vunpack.c.l.b16 %v2361_v49  ;;  %v2182_v26 = vadd.f32 %v2181_v35, %v1907_v11  ;;  %v2100_v53 = vadd.f32 %v2099_v21, %v1835_v3  ;;  %v1841_v23 = vmax.f32 %v1310_v31, 0.0  ;;  %2468 = vmatpush.bf16.msrb.mxu1 %v3325_v62 }
 0x2ae   :  { %v1315_v42 = vadd.f32 %v4231_v14, %v3650_v13  ;;  %v1913_v3 = vmax.f32 %v1490_v50, 0.0  ;;  %v1495_v12 = vadd.f32 %v4231_v14, %v3761_v63  ;;  %v1842_v38 = vmax.f32 %v1312_v30, 0.0 }
 0x2af   :  { %v4276_v36 = vsel %vm2344_vm1, %v2397_v61, %v2396_v34  ;;  %v2183_v6 = vadd.f32 %v2182_v26, %v1908_v40  ;;  %v2101_v25 = vadd.f32 %v2100_v53, %v1836_v4  ;;  %v1317_v49 = vadd.f32 %v4231_v14, %v3665_v28  ;;  %v4480_v28 = vld [vmem:[#allocation9_spill] sm:$0xff]  ;;  %v4314_v53 = vpop.f32.mrf.mxu3 }
 0x2b0   :  { %v1320_v13 = vadd.f32 %v4231_v14, %v3677_v44  ;;  %v1322_v63 = vadd.f32 %v4231_v14, %v3689_v1  ;;  %v1914_v35 = vmax.f32 %v1492_v47, 0.0  ;;  %v1497_v21 = vadd.f32 %v4231_v14, %v3767_v20  ;;  %v4481_v20 = vld [vmem:[#allocation3_spill] sm:$0xff]  ;;  %v4486_v47 = vld [vmem:[#allocation6_spill] sm:$0xff] }
 0x2b1   :  { %v2184_v18 = vadd.f32 %v2183_v6, %v1909_v46  ;;  %v2102_v7 = vadd.f32 %v2101_v25, %v1837_v45  ;;  %v1843_v40 = vmax.f32 %v1315_v42, 0.0  ;;  %v1325_v34 = vadd.f32 %v4231_v14, %v4479_v22  ;;  %v4482_v25 = vld [vmem:[#allocation11_spill] sm:$0xff] }
 0x2b2   :  { %v1915_v61 = vmax.f32 %v1495_v12, 0.0  ;;  %v1500_v26 = vadd.f32 %v4231_v14, %v4480_v28  ;;  %v1844_v45 = vmax.f32 %v1317_v49, 0.0  ;;  %v1845_v59 = vmax.f32 %v1320_v13, 0.0  ;;  %v4488_v12 = vld [vmem:[#allocation15_spill] sm:$0xff] }
 0x2b3   :  { %v2185_v2 = vadd.f32 %v2184_v18, %v1910_v55  ;;  %v2103_v32 = vadd.f32 %v2102_v7, %v1838_v0  ;;  %v1846_v46 = vmax.f32 %v1322_v63, 0.0  ;;  %v1327_v52 = vadd.f32 %v4231_v14, %v4481_v20  ;;  %v4483_v18 = vld [vmem:[#allocation4_spill] sm:$0xff]  ;;  %v4489_v63 = vld [vmem:[#allocation17_spill] sm:$0xff] }
 0x2b4   :  { %v1916_v6 = vmax.f32 %v1497_v21, 0.0  ;;  %v1502_v0 = vadd.f32 %v4231_v14, %v4482_v25  ;;  %v1847_v5 = vmax.f32 %v1325_v34, 0.0  ;;  %v1330_v7 = vadd.f32 %v4231_v14, %v4483_v18  ;;  %v4493_v25 = vld [vmem:[#allocation21_spill] sm:$0xff] }
 0x2b5   :  { %v2186_v56 = vadd.f32 %v2185_v2, %v1911_v17  ;;  %v2104_v54 = vadd.f32 %v2103_v32, %v1839_v41  ;;  %v4484_v41 = vld [vmem:[#allocation5_spill] sm:$0xff]  ;;  %v1742_v17 = vadd.f32 %v4231_v14, %v4173_v24  ;;  %v1917_v50 = vmax.f32 %v1500_v26, 0.0 }
 0x2b6   :  { %v1332_v31 = vadd.f32 %v4231_v14, %v4484_v41  ;;  %v4485_v2 = vld [vmem:[#allocation13_spill] sm:$0xff]  ;;  %v1745_v42 = vadd.f32 %v4231_v14, %v4184_v8  ;;  %v1507_v24 = vadd.f32 %v4231_v14, %v4488_v12  ;;  %v1849_v62 = vmax.f32 %v1330_v7, 0.0 }
 0x2b7   :  { %v2187_v37 = vadd.f32 %v2186_v56, %v1912_v51  ;;  %v2105_v11 = vadd.f32 %v2104_v54, %v1840_v43  ;;  %v1505_v32 = vadd.f32 %v4231_v14, %v4485_v2  ;;  %v1848_v51 = vmax.f32 %v1327_v52, 0.0  ;;  %v4487_v54 = vld [vmem:[#allocation7_spill] sm:$0xff] }
 0x2b8   :  { %v1335_v56 = vadd.f32 %v4231_v14, %v4486_v47  ;;  %v1850_v27 = vmax.f32 %v1332_v31, 0.0  ;;  %v1747_v49 = vadd.f32 %v4231_v14, %v4196_v15  ;;  %v1750_v22 = vadd.f32 %v4231_v14, %v4206_v57  ;;  %v4491_v15 = vld [vmem:[#allocation8_spill] sm:$0xff] }
 0x2b9   :  { %v2188_v4 = vadd.f32 %v2187_v37, %v1913_v3  ;;  %v2106_v60 = vadd.f32 %v2105_v11, %v1841_v23  ;;  %v1337_v23 = vadd.f32 %v4231_v14, %v4487_v54  ;;  %v1918_v3 = vmax.f32 %v1502_v0, 0.0 }
 0x2ba   :  { %v1919_v13 = vmax.f32 %v1505_v32, 0.0  ;;  %v1920_v34 = vmax.f32 %v1507_v24, 0.0  ;;  %v2016_v52 = vmax.f32 %v1747_v49, 0.0  ;;  %v1515_v57 = vadd.f32 %v4231_v14, %v4493_v25  ;;  %v4502_v25 = vld [vmem:[#allocation16_spill] sm:$0xff] }
 0x2bb   :  { %v2189_v44 = vadd.f32 %v2188_v4, %v1914_v35  ;;  %v2107_v1 = vadd.f32 %v2106_v60, %v1842_v38  ;;  %v2014_v38 = vmax.f32 %v1742_v17, 0.0  ;;  %v1510_v35 = vadd.f32 %v4231_v14, %v4489_v63  ;;  %v4495_v17 = vld [vmem:[#allocation23_spill] sm:$0xff] }
 0x2bc   :  { %v1851_v60 = vmax.f32 %v1335_v56, 0.0  ;;  %v1852_v8 = vmax.f32 %v1337_v23, 0.0  ;;  %v1755_v41 = vadd.f32 %v4231_v14, %v4226_v58  ;;  %v1923_v47 = vmax.f32 %v1515_v57, 0.0  ;;  %v4496_v56 = vld [vmem:[#allocation25_spill] sm:$0xff] }
 0x2bd   :  { %v2190_v10 = vadd.f32 %v2189_v44, %v1915_v61  ;;  %v2108_v55 = vadd.f32 %v2107_v1, %v1843_v40  ;;  %v2015_v40 = vmax.f32 %v1745_v42, 0.0  ;;  %v4490_v61 = vld [vmem:[#allocation19_spill] sm:$0xff]  ;;  %v1764_v44 = vpop.f32.mrf.mxu3  ;;  %v1520_v54 = vadd.f32 %v4231_v14, %v4496_v56 }
 0x2be   :  { %v1512_v28 = vadd.f32 %v4231_v14, %v4490_v61  ;;  %v2019_v12 = vmax.f32 %v1755_v41, 0.0  ;;  %v1760_v24 = vadd.f32 %v4231_v14, %v4282_v9  ;;  %v4500_v61 = vld [vmem:[#allocation14_spill] sm:$0xff]  ;;  %v1350_v57 = vadd.f32 %v4231_v14, %v4502_v25 }
 0x2bf   :  { %v2191_v43 = vadd.f32 %v2190_v10, %v1916_v6  ;;  %v2109_v30 = vadd.f32 %v2108_v55, %v1844_v45  ;;  %v1340_v45 = vadd.f32 %v4231_v14, %v4491_v15  ;;  %v1921_v6 = vmax.f32 %v1510_v35, 0.0  ;;  %v4494_v55 = vld [vmem:[#allocation10_spill] sm:$0xff] }
 0x2c0   :  { %v1342_v18 = vadd.f32 %v4231_v14, %v4494_v55  ;;  %v1922_v31 = vmax.f32 %v1512_v28, 0.0  ;;  %v1347_v28 = vadd.f32 %v4231_v14, %v4500_v61 }
 0x2c1   :  { %v2192_v37 = vadd.f32 %v2191_v43, %v1917_v50  ;;  %v2110_v11 = vadd.f32 %v2109_v30, %v1845_v59  ;;  %v4492_v59 = vld [vmem:[#allocation33_spill] sm:$0xff]  ;;  %v1517_v50 = vadd.f32 %v4231_v14, %v4495_v17  ;;  %v1853_v32 = vmax.f32 %v1340_v45, 0.0  ;;  %v4501_v45 = vld [vmem:[#allocation31_spill] sm:$0xff] }
 0x2c2   :  { %v2304_v20 = vadd.f32 %v4492_v59, %v2014_v38  ;;  %v1527_v59 = vadd.f32 %v4231_v14, %v4501_v45 }
 0x2c3   :  { %v2193_v21 = vadd.f32 %v2192_v37, %v1918_v3  ;;  %v2111_v4 = vadd.f32 %v2110_v11, %v1846_v46  ;;  %v1752_v46 = vadd.f32 %v4231_v14, %v4213_v16  ;;  %v1854_v3 = vmax.f32 %v1342_v18, 0.0  ;;  %v4497_v11 = vld [vmem:[#allocation27_spill] sm:$0xff] }
 0x2c4   :  { %v2305_v7 = vadd.f32 %v2304_v20, %v2015_v40  ;;  %v1924_v37 = vmax.f32 %v1517_v50, 0.0  ;;  %v1856_v18 = vmax.f32 %v1347_v28, 0.0 }
 0x2c5   :  { %v2194_v26 = vadd.f32 %v2193_v21, %v1919_v13  ;;  %v2112_v1 = vadd.f32 %v2111_v4, %v1847_v5  ;;  %v2017_v5 = vmax.f32 %v1750_v22, 0.0  ;;  %v2018_v30 = vmax.f32 %v1752_v46, 0.0  ;;  %v4498_v13 = vld [vmem:[#allocation12_spill] sm:$0xff]  ;;  %v4499_v4 = vld [vmem:[#allocation29_spill] sm:$0xff]  ;;  %v1766_v9 = vpop.f32.mrf.mxu3 }
 0x2c6   :  { %v2306_v43 = vadd.f32 %v2305_v7, %v2016_v52  ;;  %v1925_v21 = vmax.f32 %v1520_v54, 0.0  ;;  %v1525_v40 = vadd.f32 %v4231_v14, %v4499_v4 }
 0x2c7   :  { %v2113_v0 = vadd.f32 %v2112_v1, %v1848_v51  ;;  %v2195_v10 = vadd.f32 %v2194_v26, %v1920_v34  ;;  %v1757_v51 = vadd.f32 %v4231_v14, %v4254_v48  ;;  %v1345_v48 = vadd.f32 %v4231_v14, %v4498_v13 }
 0x2c8   :  { %v2307_v58 = vadd.f32 %v2306_v43, %v2017_v5  ;;  %v2021_v26 = vmax.f32 %v1760_v24, 0.0  ;;  %v1765_v1 = vadd.f32 %v4231_v14, %v1764_v44  ;;  %v4503_v5 = vld [vmem:[#allocation18_spill] sm:$0xff]  ;;  %v4504_v43 = vld [vmem:[#allocation20_spill] sm:$0xff] }
 0x2c9   :  { %v2114_v2 = vadd.f32 %v2113_v0, %v1849_v62  ;;  %v2196_v16 = vadd.f32 %v2195_v10, %v1921_v6  ;;  %v1522_v62 = vadd.f32 %v4231_v14, %v4497_v11  ;;  %v2020_v35 = vmax.f32 %v1757_v51, 0.0 }
 0x2ca   :  { %v2308_v63 = vadd.f32 %v2307_v58, %v2018_v30  ;;  %v1855_v52 = vmax.f32 %v1345_v48, 0.0  ;;  %v1927_v0 = vmax.f32 %v1525_v40, 0.0  ;;  %v2023_v44 = vmax.f32 %v1765_v1, 0.0  ;;  %v4507_v48 = vld [vmem:[#allocation26_spill] sm:$0xff] }
 0x2cb   :  { %v2115_v23 = vadd.f32 %v2114_v2, %v1850_v27  ;;  %v2197_v42 = vadd.f32 %v2196_v16, %v1922_v31  ;;  %v1762_v27 = vadd.f32 %v4231_v14, %v4314_v53  ;;  %v1926_v15 = vmax.f32 %v1522_v62, 0.0  ;;  %v4510_v1 = vld [vmem:[#allocation30_spill] sm:$0xff] }
 0x2cc   :  { %v1352_v41 = vadd.f32 %v4231_v14, %v4503_v5  ;;  %v1928_v31 = vmax.f32 %v1527_v59, 0.0  ;;  %v1355_v30 = vadd.f32 %v4231_v14, %v4504_v43  ;;  %v2167_v58 = vrot.slane %v4208_v39, 4 }
 0x2cd   :  { %v2116_v38 = vadd.f32 %v2115_v23, %v1851_v60  ;;  %v2198_v49 = vadd.f32 %v2197_v42, %v1923_v47  ;;  %v2309_v60 = vadd.f32 %v2308_v63, %v2019_v12  ;;  %v2022_v6 = vmax.f32 %v1762_v27, 0.0  ;;  %v4505_v23 = vld [vmem:[#allocation22_spill] sm:$0xff] }
 0x2ce   :  { %v1858_v54 = vmax.f32 %v1352_v41, 0.0  ;;  %v1357_v42 = vadd.f32 %v4231_v14, %v4505_v23  ;;  %v1859_v24 = vmax.f32 %v1355_v30, 0.0  ;;  %v1362_v63 = vadd.f32 %v4231_v14, %v4507_v48 }
 0x2cf   :  { %v2117_v22 = vadd.f32 %v2116_v38, %v1852_v8  ;;  %v2199_v34 = vadd.f32 %v2198_v49, %v1924_v37  ;;  %v2310_v46 = vadd.f32 %v2309_v60, %v2020_v35  ;;  %v1767_v8 = vadd.f32 %v4231_v14, %v1766_v9  ;;  %v4506_v37 = vld [vmem:[#allocation24_spill] sm:$0xff] }
 0x2d0   :  { %v1360_v11 = vadd.f32 %v4231_v14, %v4506_v37  ;;  %v2241_v49 = vrot.slane %v4202_v19, 4  ;;  %v1860_v13 = vmax.f32 %v1357_v42, 0.0  ;;  %v4508_v35 = vld [vmem:[#allocation32_spill] sm:$0xff]  ;;  %v2168_v4 = vadd.f32 %v2167_v58, %v4208_v39 }
 0x2d1   :  { %v2118_v20 = vadd.f32 %v2117_v22, %v1853_v32  ;;  %v2200_v53 = vadd.f32 %v2199_v34, %v1925_v21  ;;  %v2311_v7 = vadd.f32 %v2310_v46, %v2021_v26  ;;  %v2024_v16 = vmax.f32 %v1767_v8, 0.0  ;;  %v4509_v9 = vld [vmem:[#allocation28_spill] sm:$0xff] }
 0x2d2   :  { %v1857_v32 = vmax.f32 %v1350_v57, 0.0  ;;  %v2278_v27 = vrot.slane %v4508_v35, 4  ;;  %v1861_v22 = vmax.f32 %v1360_v11, 0.0  ;;  %v1365_v34 = vadd.f32 %v4231_v14, %v4509_v9 }
 0x2d3   :  { %v2119_v10 = vadd.f32 %v2118_v20, %v1854_v3  ;;  %v2201_v55 = vadd.f32 %v2200_v53, %v1926_v15  ;;  %v2312_v2 = vadd.f32 %v2311_v7, %v2022_v6  ;;  %v2242_v60 = vadd.f32 %v2241_v49, %v4202_v19  ;;  %v3334_v6 = vld [vmem:[%s4441_s5 + $0x8] sm:$0xff] }
 0x2d4   :  { %v1862_v26 = vmax.f32 %v1362_v63, 0.0  ;;  %v1367_v15 = vadd.f32 %v4231_v14, %v4510_v1  ;;  %v2279_v45 = vadd.f32 %v2278_v27, %v4508_v35  ;;  %v2169_v20 = vrot.slane %v2168_v4, 2  ;;  %2550 = vmatpush.bf16.msrb.mxu2 %v3334_v6  ;;  %v3333_v14 = vld [vmem:[%s4441_s5] sm:$0xff] }
 0x2d5   :  { %v2120_v17 = vadd.f32 %v2119_v10, %v1855_v52  ;;  %v2202_v50 = vadd.f32 %v2201_v55, %v1927_v0  ;;  %v2313_v56 = vadd.f32 %v2312_v2, %v2023_v44  ;;  %v1863_v52 = vmax.f32 %v1365_v34, 0.0 }
 0x2d6   :  { %v2243_v8 = vrot.slane %v2242_v60, 2  ;;  %v1864_v25 = vmax.f32 %v1367_v15, 0.0  ;;  %v2280_v57 = vrot.slane %v2279_v45, 2  ;;  %v2170_v0 = vadd.f32 %v2169_v20, %v2168_v4 }
 0x2d7   :  { %v2121_v51 = vadd.f32 %v2120_v17, %v1856_v18  ;;  %v2203_v47 = vadd.f32 %v2202_v50, %v1928_v31  ;;  %v2314_v12 = vadd.f32 %v2313_v56, %v2024_v16 }
 0x2d8   :  { %v2244_v7 = vadd.f32 %v2243_v8, %v2242_v60  ;;  %v2281_v44 = vadd.f32 %v2280_v57, %v2279_v45  ;;  %2551 = vmatpush.bf16.msrb.mxu2 %v3333_v14  ;;  %v2171_v41 = vrot.slane %v2170_v0, 1 }
 0x2d9   :  { %v2122_v3 = vadd.f32 %v2121_v51, %v1857_v32  ;;  %v2204_v38 = vrot.slane %v2203_v47, 4  ;;  %v2315_v40 = vrot.slane %v2314_v12, 4 }
 0x2da   :  { %v2245_v2 = vrot.slane %v2244_v7, 1  ;;  %v2282_v16 = vrot.slane %v2281_v44, 1  ;;  %v2172_v43 = vadd.f32 %v2171_v41, %v2170_v0 }
 0x2db   :  { %v2123_v62 = vadd.f32 %v2122_v3, %v1858_v54  ;;  %v2205_v28 = vadd.f32 %v2204_v38, %v2203_v47  ;;  %v2316_v53 = vadd.f32 %v2315_v40, %v2314_v12 }
 0x2dc   :  { %v2246_v56 = vadd.f32 %v2245_v2, %v2244_v7  ;;  %v2283_v54 = vadd.f32 %v2282_v16, %v2281_v44  ;;  %v2331_v42 = vmul.f32 %v4237_v29, %v2172_v43 }
 0x2dd   :  { %v2124_v21 = vadd.f32 %v2123_v62, %v1859_v24  ;;  %v2206_v46 = vrot.slane %v2205_v28, 2  ;;  %v2317_v10 = vrot.slane %v2316_v53, 2 }
 0x2de   :  { %v2333_v24 = vmul.f32 %v4237_v29, %v2246_v56  ;;  %v2334_v37 = vmul.f32 %v4237_v29, %v2283_v54  ;;  %v2363_v62 = vpack.c.bf16 %v2331_v42, %v2331_v42 }
 0x2df   :  { %v2125_v61 = vadd.f32 %v2124_v21, %v1860_v13  ;;  %v2207_v18 = vadd.f32 %v2206_v46, %v2205_v28  ;;  %v2318_v31 = vadd.f32 %v2317_v10, %v2316_v53  ;;  %v3367_v53 = vld [vmem:[%s4442_s4] ss:$0 sm:$0xff] }
 0x2e0   :  { %v2365_v63 = vpack.c.bf16 %v2333_v24, %v2333_v24  ;;  %v2366_v27 = vpack.c.bf16 %v2334_v37, %v2334_v37  ;;  %v2399_v40 = vunpack.c.l.b16 %v2363_v62 }
 0x2e1   :  { %v2126_v59 = vadd.f32 %v2125_v61, %v1861_v22  ;;  %v2208_v50 = vrot.slane %v2207_v18, 1  ;;  %v2319_v30 = vrot.slane %v2318_v31, 1 }
 0x2e2   :  { %v2401_v28 = vunpack.c.l.b16 %v2365_v63 }
 0x2e3   :  { %v2127_v39 = vadd.f32 %v2126_v59, %v1862_v26  ;;  %v2209_v47 = vadd.f32 %v2208_v50, %v2207_v18  ;;  %v2320_v3 = vadd.f32 %v2319_v30, %v2318_v31  ;;  %v2402_v26 = vunpack.c.l.b16 %v2366_v27 }
 0x2e5   :  { %v2128_v19 = vadd.f32 %v2127_v39, %v1863_v52  ;;  %v2332_v12 = vmul.f32 %v4237_v29, %v2209_v47  ;;  %v2335_v38 = vmul.f32 %v4237_v29, %v2320_v3 }
 0x2e7   :  { %v2129_v55 = vadd.f32 %v2128_v19, %v1864_v25  ;;  %v2364_v48 = vpack.c.bf16 %v2332_v12, %v2332_v12  ;;  %v3368_v25 = vld [vmem:[%s4444_s6] ss:$0 sm:$0xff] }
 0x2e9   :  { %v2130_v5 = vrot.slane %v2129_v55, 4  ;;  %v2400_v34 = vunpack.c.l.b16 %v2364_v48 }
 0x2eb   :  { %v2131_v17 = vadd.f32 %v2130_v5, %v2129_v55 }
 0x2ed   :  { %v2132_v32 = vrot.slane %v2131_v17, 2 }
 0x2ef   :  { %v2133_v51 = vadd.f32 %v2132_v32, %v2131_v17 }
 0x2f1   :  { %v2134_v23 = vrot.slane %v2133_v51, 1 }
 0x2f3   :  { %v2135_v58 = vadd.f32 %v2134_v23, %v2133_v51 }
 0x2f5   :  { %v2330_v11 = vmul.f32 %v4237_v29, %v2135_v58  ;;  %v2367_v29 = vpack.c.bf16 %v2335_v38, %v2335_v38 }
 0x2f7   :  { %v2347_v49 = vsel %vm2346_vm2, %v2330_v11, %v4265_v33  ;;  %v2362_v13 = vpack.c.bf16 %v2330_v11, %v2330_v11  ;;  %v2403_v15 = vunpack.c.l.b16 %v2367_v29 }
 0x2f8   :  { %v2349_v35 = vsel %vm2348_vm3, %v2331_v42, %v2347_v49 }
 0x2f9   :  { %v2351_v21 = vsel %vm2350_vm4, %v2332_v12, %v2349_v35  ;;  %v2398_v4 = vunpack.c.l.b16 %v2362_v13 }
 0x2fa   :  { %v2353_v22 = vsel %vm2352_vm5, %v2333_v24, %v2351_v21 }
 0x2fb   :  { %v2355_v9 = vsel %vm2354_vm6, %v2334_v37, %v2353_v22  ;;  %v2405_v33 = vsel %vm2346_vm2, %v2398_v4, %v4276_v36 }
 0x2fc   :  { %v2357_v61 = vsel %vm2356_vm7, %v2335_v38, %v2355_v9  ;;  %v2406_v60 = vsel %vm2348_vm3, %v2399_v40, %v2405_v33 }
 0x2fd   :  { %2359 = vst [vmem:[%s4443_s7] sm:$0xff] %v2357_v61  ;;  %v2407_v1 = vsel %vm2350_vm4, %v2400_v34, %v2406_v60 }
 0x2fe   :  { %v2408_v45 = vsel %vm2352_vm5, %v2401_v28, %v2407_v1 }
 0x2ff   :  { %v2409_v59 = vsel %vm2354_vm6, %v2402_v26, %v2408_v45 }
 0x300   :  { %v2410_v20 = vsel %vm2356_vm7, %v2403_v15, %v2409_v59 }
 0x301   :  { %v2411_v36 = vpack.c.b16 %v2410_v20, %v2410_v20 }
 0x303   :  { %2469 = vmatmul.bf16.vlgmr.msrb.gmra.mxu1 %v2411_v36 }
 0x380   :  { %v2470_v52 = vpop.f32.mrf.mxu1 }
 0x381   :  { %v2471_v39 = vadd.f32 %v3367_v53, %v2470_v52 }
 0x383   :  { %v2474_v46 = vmax.f32 %v2471_v39, 0.0 }
 0x385   :  { %v2475_v6 = vpack.c.bf16 %v2474_v46, %v2474_v46 }
 0x387   :  { %2552 = vmatmul.bf16.vlgmr.msrb.gmra.mxu2 %v2475_v6 }
 0x388   :  { %v2472_v8 = vpop.f32.mrf.mxu1 }
 0x40a   :  { %v2553_v57 = vpop.f32.mrf.mxu2 }
 0x40b   :  { %v2554_v19 = vadd.f32 %v3368_v25, %v2553_v57 }
 0x40d   :  { %v2557_v14 = vmul.f32 %v2554_v19, %v2554_v19 }
 0x40f   :  { %2558 = vadd.xlane.f32.xlu0 %v2557_v14 }
 0x412   :  { %v2555_v0 = vpop.f32.mrf.mxu2 }
 0x482   :  { %v2559_v10 = vpop.xlane.xlu0 %2558 }
 0x483   :  { %v2560_v55 = vadd.f32 1e-12, %v2559_v10 }
 0x485   :  { %3371 = vrsqrt.f32 %v2560_v55  ;;  %vm2567_vm9 = vweird.f32 %v2560_v55 }
 0x48b   :  { %v3372_v18 = vpop.eup %3371 }
 0x48c   :  { %v2562_v7 = vmul.f32 %v3372_v18, %v2560_v55  ;;  %vm2568_vm8 = vweird.f32 %v3372_v18 }
 0x48d   :  { %vm2569_vm10 = vmor %vm2567_vm9, %vm2568_vm8 }
 0x48e   :  { %v2563_v44 = vmul.f32 %v3372_v18, %v2562_v7 }
 0x490   :  { %v2564_v5 = vmul.f32 0.5, %v2563_v44 }
 0x492   :  { %v2565_v41 = vsub.f32 1.5, %v2564_v5 }
 0x494   :  { %v2566_v31 = vmul.f32 %v3372_v18, %v2565_v41 }
 0x496   :  { %v2570_v17 = vsel %vm2569_vm10, %v3372_v18, %v2566_v31 }
 0x497   :  { %v2571_v50 = vmul.f32 %v2570_v17, %v2554_v19 }
 0x499   :  { %2572 = vst [vmem:[%s4445_s8] sm:$0xff] %v2571_v50 }

</bundles_post_ra>
